<compile_context>
chip_gen: v7x
topology: tpu7x:2x2x1
jax: 0.10.0
libtpu: 0.0.40
codegen_flags: <defaults>
</compile_context>

<pallas_src>
import jax
import jax.numpy as jnp
from jax.experimental import pallas as pl
from jax.experimental.pallas import tpu as pltpu

K = 5            # every conv / deconv uses a (1, 5) kernel
OUT_LANES = 128  # lane-dense output slab width; result lives in columns [0, 11)


# ----------------------------------------------------------------------------
# Fused kernel: whole Autoencoder forward for one batch tile (BT samples).
# ----------------------------------------------------------------------------
def _autoencoder_kernel(x_ref,
                        we1, be1, we2, be2, we3, be3,
                        wd1, bd1, wd2, bd2, wd3, bd3, wd4, bd4,
                        wfc, bfc,
                        o_ref):
    """x_ref : (BT, 20, 12) NWC input tile (H=1 squeezed)
    w*    : (K*Cin, Cout) im2col-folded weights (taps pre-flipped for the
            ConvTranspose layers; flatten-order permutations folded into
            wd1 / wfc; wfc pre-padded to 128 lanes)
    b*    : (1, Cout) biases (bd1 tiled over its 3 live taps, bfc zero-padded)
    o_ref : (BT, 1, 128) lane-dense output slab, result in columns [0, 11)
    """
    BT = x_ref.shape[0]
    f32 = jnp.float32

    def conv(x, pad, w_ref, b_ref, act):
        """1-D conv along W on a (w_in, c_in) value as ONE MXU matmul over a
        value-level im2col slab (pad + shifted slices); bias+act fused."""
        w_in, c_in = x.shape
        w_out = w_in + 2 * pad - (K - 1)
        z = jnp.zeros((pad, c_in), f32)
        xp = jnp.concatenate([z, x, z], axis=0)                     # (w_in+2p, c_in)
        cols = jnp.concatenate([xp[k:k + w_out, :] for k in range(K)],
                               axis=1)                              # (w_out, K*c_in)
        y = jnp.dot(cols, w_ref[...], preferred_element_type=f32) + b_ref[...]
        if act == "relu":
            y = jnp.maximum(y, 0.0)
        elif act == "sigmoid":
            # sigmoid(x) = (1 + tanh(x/2)) / 2 : overflow-safe, runs on the EUP.
            y = 0.5 * (jnp.tanh(0.5 * y) + 1.0)
        return y

    for b in range(BT):                       # static unroll over the batch tile
        x = x_ref[b]                                                # (20, 12)

        # --------------------------- encoder ---------------------------
        # Conv2d(12, 16, (1,5), pad (0,1)) + ReLU : (20, 12) -> (18, 16)
        y = conv(x, 1, we1, be1, "relu")
        # MaxPool2d((1, 2)) : (18, 16) -> (9, 16), value-level pairwise maxima.
        y = jnp.concatenate(
            [jnp.maximum(y[2 * j:2 * j + 1, :], y[2 * j + 1:2 * j + 2, :])
             for j in range(9)], axis=0)
        # Conv2d(16, 32, (1,5), pad (0,1)) -- no activation in the torch model
        y = conv(y, 1, we2, be2, "none")                            # (7, 32)
        # Conv2d(32, 32, (1,5), pad (0,1)) + ReLU
        y = conv(y, 1, we3, be3, "relu")                            # (5, 32)
        # Flatten (W-major; torch's channel-major order is folded into wd1)
        flat = jnp.concatenate([y[w:w + 1, :] for w in range(5)], axis=1)  # (1, 160)

        # --------------------------- decoder ---------------------------
        # ConvTranspose2d(160, 64) on a W=1 input: only taps 1..3 ever see data,
        # so it is a single dense matmul (+ ReLU); output columns are w*64 + c.
        y = jnp.maximum(
            jnp.dot(flat, wd1[...], preferred_element_type=f32) + bd1[...],
            0.0)                                                    # (1, 192)
        # Regroup to W-major rows (3, 64) via lane slices (no scratch buffer).
        y = jnp.concatenate([y[:, w * 64:(w + 1) * 64] for w in range(3)],
                            axis=0)                                 # (3, 64)
        # ConvTranspose2d(64, 32) + ReLU  (regular conv, flipped taps, pad 3)
        y = conv(y, 3, wd2, bd2, "relu")                            # (5, 32)
        # ConvTranspose2d(32, 16) + ReLU
        y = conv(y, 3, wd3, bd3, "relu")                            # (7, 16)
        # ConvTranspose2d(16, 11) + Sigmoid
        y = conv(y, 3, wd4, bd4, "sigmoid")                         # (9, 11)
        # Flatten (W-major; permutation folded into wfc), Linear(99, 11) with
        # the weight pre-padded to 128 lanes -> one unmasked lane-dense store.
        flat = jnp.concatenate([y[w:w + 1, :] for w in range(9)], axis=1)  # (1, 99)
        out = jnp.dot(flat, wfc[...], preferred_element_type=f32) + bfc[...]  # (1, 128)
        o_ref[b, :, :] = out


# ----------------------------------------------------------------------------
# Weight folding (PyTorch layouts -> im2col matrices; flatten orders folded in)
# ----------------------------------------------------------------------------
def _conv_w_im2col(w):
    """Conv2d weight (Cout, Cin, 1, K) -> (K*Cin, Cout), rows ordered k*Cin+ci."""
    c_out, c_in, _, k = w.shape
    return jnp.transpose(w[:, :, 0, :], (2, 1, 0)).reshape(k * c_in, c_out)


def _deconv_w_im2col(w):
    """ConvTranspose2d weight (Cin, Cout, 1, K) -> flipped taps -> (K*Cin, Cout)."""
    c_in, c_out, _, k = w.shape
    wf = jnp.transpose(w[:, :, 0, ::-1], (2, 0, 1))        # (K, Cin, Cout)
    return wf.reshape(k * c_in, c_out)


def _d1_weight(w):
    """ConvTranspose2d(160, 64) acting on a W=1 input, folded into one matmul.

    Only taps k=1,2,3 ever see data; output column layout is [w*64 + cout] for
    w in {0,1,2}.  Rows are permuted from torch's channel-major flatten order
    (c*5 + w) to the kernel's W-major order (w*32 + c)."""
    c_in, c_out, _, _ = w.shape                            # (160, 64, 1, 5)
    wf = jnp.transpose(w[:, :, 0, ::-1], (2, 0, 1))        # (5, 160, 64), flipped
    w_cm = jnp.concatenate([wf[3], wf[2], wf[1]], axis=1)  # (160, 192), rows c*5+w
    return w_cm.reshape(32, 5, 3 * c_out).transpose(1, 0, 2).reshape(c_in, 3 * c_out)


def _fc_weight(w):
    """Linear(99, 11) torch weight (11, 99) -> (99, 128): rows permuted from
    channel-major flatten order (c*9 + w) to W-major (w*11 + c), columns
    zero-padded to 128 lanes so the kernel ends with one unmasked store."""
    wt = jnp.transpose(w)                                  # (99, 11), rows c*9+w
    wt = wt.reshape(11, 9, 11).transpose(1, 0, 2).reshape(99, 11)   # rows w*11+c
    return jnp.pad(wt, ((0, 0), (0, OUT_LANES - 11)))


def _pick_bt(batch):
    """Batch-tile size: 2 'parallel' grid steps when batch is even (one per
    v7x TensorCore; only one extra ~0.35us step on single-TC v5e/v6e),
    otherwise a single step.  The per-step sample loop is a static unroll, so
    cap it to keep kernel code size bounded."""
    bt = batch // 2 if (batch >= 2 and batch % 2 == 0) else batch
    while bt > 16 or batch % bt != 0:
        bt -= 1
    return max(bt, 1)


def _const_spec(a):
    # Constant index map: weight stays resident in VMEM across all grid steps.
    # TODO(synk): could pass pipeline_mode=pl.Buffered(1) to drop the unused
    # second buffer for these constants; left at the default for safety.
    return pl.BlockSpec(a.shape, lambda i, _n=a.ndim: (0,) * _n)


# ----------------------------------------------------------------------------
# Model
# ----------------------------------------------------------------------------
def init_params(key):
    specs = {
        "e1_w": (16, 12, 1, 5), "e1_b": (16,),    # Conv2d(12, 16, (1,5), pad (0,1))
        "e2_w": (32, 16, 1, 5), "e2_b": (32,),    # Conv2d(16, 32, (1,5), pad (0,1))
        "e3_w": (32, 32, 1, 5), "e3_b": (32,),    # Conv2d(32, 32, (1,5), pad (0,1))
        "d1_w": (160, 64, 1, 5), "d1_b": (64,),   # ConvTranspose2d(160, 64)
        "d2_w": (64, 32, 1, 5), "d2_b": (32,),    # ConvTranspose2d(64, 32)
        "d3_w": (32, 16, 1, 5), "d3_b": (16,),    # ConvTranspose2d(32, 16)
        "d4_w": (16, 11, 1, 5), "d4_b": (11,),    # ConvTranspose2d(16, 11)
        "fc_w": (11, 99), "fc_b": (11,),          # Linear(99, 11) (torch (out, in))
    }
    keys = jax.random.split(key, len(specs))
    return {name: 0.05 * jax.random.normal(k, shape, jnp.float32)
            for k, (name, shape) in zip(keys, specs.items())}


@jax.jit
def autoencoder_forward(params, x_nchw):
    """x_nchw: (B, 12, 1, 20) float32 (PyTorch NCHW).  Returns squeeze((B, 11))."""
    batch = x_nchw.shape[0]
    assert x_nchw.shape[1:] == (12, 1, 20), x_nchw.shape
    x = jnp.transpose(x_nchw[:, :, 0, :], (0, 2, 1)).astype(jnp.float32)  # (B, 20, 12)

    consts = (
        _conv_w_im2col(params["e1_w"]), params["e1_b"].reshape(1, -1),
        _conv_w_im2col(params["e2_w"]), params["e2_b"].reshape(1, -1),
        _conv_w_im2col(params["e3_w"]), params["e3_b"].reshape(1, -1),
        _d1_weight(params["d1_w"]), jnp.tile(params["d1_b"], 3).reshape(1, -1),
        _deconv_w_im2col(params["d2_w"]), params["d2_b"].reshape(1, -1),
        _deconv_w_im2col(params["d3_w"]), params["d3_b"].reshape(1, -1),
        _deconv_w_im2col(params["d4_w"]), params["d4_b"].reshape(1, -1),
        _fc_weight(params["fc_w"]),
        jnp.pad(params["fc_b"].reshape(1, -1), ((0, 0), (0, OUT_LANES - 11))),
    )

    bt = _pick_bt(batch)
    out_padded = pl.pallas_call(
        _autoencoder_kernel,
        out_shape=jax.ShapeDtypeStruct((batch, 1, OUT_LANES), jnp.float32),
        grid=(batch // bt,),
        in_specs=[pl.BlockSpec((bt, 20, 12), lambda i: (i, 0, 0))]
                 + [_const_spec(c) for c in consts],
        out_specs=pl.BlockSpec((bt, 1, OUT_LANES), lambda i: (i, 0, 0)),
        compiler_params=pltpu.CompilerParams(dimension_semantics=("parallel",)),
    )(x, *consts)

    # torch.squeeze on the (B, 11) result (drops the batch dim when B == 1).
    return jnp.squeeze(out_padded[:, 0, :11])


if __name__ == "__main__":
    key_params, key_x = jax.random.split(jax.random.PRNGKey(0))
    params = init_params(key_params)
    # Input shape implied by the module: (B, 12, 1, 20) so the encoder flattens
    # to 160 and the decoder flattens to 99 before the Linear(99, 11).
    x = jax.random.normal(key_x, (2, 12, 1, 20), jnp.float32)

    out = jax.block_until_ready(autoencoder_forward(params, x))
    assert out.shape == (2, 11), out.shape
    assert bool(jnp.all(jnp.isfinite(out)))
    print("KERNEL_OK")
</pallas_src>

<mosaic_0001>
module attributes {stable_mosaic.version = 11 : i64} {
  func.func @_autoencoder_kernel(%arg0: i32, %arg1: memref<1x20x12xf32, #tpu.memory_space<vmem>>, %arg2: memref<60x16xf32, #tpu.memory_space<vmem>>, %arg3: memref<1x16xf32, #tpu.memory_space<vmem>>, %arg4: memref<80x32xf32, #tpu.memory_space<vmem>>, %arg5: memref<1x32xf32, #tpu.memory_space<vmem>>, %arg6: memref<160x32xf32, #tpu.memory_space<vmem>>, %arg7: memref<1x32xf32, #tpu.memory_space<vmem>>, %arg8: memref<160x192xf32, #tpu.memory_space<vmem>>, %arg9: memref<1x192xf32, #tpu.memory_space<vmem>>, %arg10: memref<320x32xf32, #tpu.memory_space<vmem>>, %arg11: memref<1x32xf32, #tpu.memory_space<vmem>>, %arg12: memref<160x16xf32, #tpu.memory_space<vmem>>, %arg13: memref<1x16xf32, #tpu.memory_space<vmem>>, %arg14: memref<80x11xf32, #tpu.memory_space<vmem>>, %arg15: memref<1x11xf32, #tpu.memory_space<vmem>>, %arg16: memref<99x128xf32, #tpu.memory_space<vmem>>, %arg17: memref<1x128xf32, #tpu.memory_space<vmem>>, %arg18: memref<1x1x128xf32, #tpu.memory_space<vmem>>) attributes {dimension_semantics = [#tpu.dimension_semantics<parallel>], iteration_bounds = array<i64: 2>, scalar_prefetch = 0 : i64, scratch_operands = 0 : i64, tpu.core_type = #tpu.core_type<tc>, window_params = [{transform_indices = @transform_0, window_bounds = array<i64: 1, 20, 12>}, {pipeline_mode = #tpu.pipeline_mode<synchronous>, transform_indices = @transform_1, window_bounds = array<i64: 60, 16>}, {pipeline_mode = #tpu.pipeline_mode<synchronous>, transform_indices = @transform_2, window_bounds = array<i64: 1, 16>}, {pipeline_mode = #tpu.pipeline_mode<synchronous>, transform_indices = @transform_3, window_bounds = array<i64: 80, 32>}, {pipeline_mode = #tpu.pipeline_mode<synchronous>, transform_indices = @transform_4, window_bounds = array<i64: 1, 32>}, {pipeline_mode = #tpu.pipeline_mode<synchronous>, transform_indices = @transform_5, window_bounds = array<i64: 160, 32>}, {pipeline_mode = #tpu.pipeline_mode<synchronous>, transform_indices = @transform_6, window_bounds = array<i64: 1, 32>}, {pipeline_mode = #tpu.pipeline_mode<synchronous>, transform_indices = @transform_7, window_bounds = array<i64: 160, 192>}, {pipeline_mode = #tpu.pipeline_mode<synchronous>, transform_indices = @transform_8, window_bounds = array<i64: 1, 192>}, {pipeline_mode = #tpu.pipeline_mode<synchronous>, transform_indices = @transform_9, window_bounds = array<i64: 320, 32>}, {pipeline_mode = #tpu.pipeline_mode<synchronous>, transform_indices = @transform_10, window_bounds = array<i64: 1, 32>}, {pipeline_mode = #tpu.pipeline_mode<synchronous>, transform_indices = @transform_11, window_bounds = array<i64: 160, 16>}, {pipeline_mode = #tpu.pipeline_mode<synchronous>, transform_indices = @transform_12, window_bounds = array<i64: 1, 16>}, {pipeline_mode = #tpu.pipeline_mode<synchronous>, transform_indices = @transform_13, window_bounds = array<i64: 80, 11>}, {pipeline_mode = #tpu.pipeline_mode<synchronous>, transform_indices = @transform_14, window_bounds = array<i64: 1, 11>}, {pipeline_mode = #tpu.pipeline_mode<synchronous>, transform_indices = @transform_15, window_bounds = array<i64: 99, 128>}, {pipeline_mode = #tpu.pipeline_mode<synchronous>, transform_indices = @transform_16, window_bounds = array<i64: 1, 128>}, {transform_indices = @transform_17, window_bounds = array<i64: 1, 1, 128>}]} {
    %c0 = arith.constant 0 : index
    %c0_0 = arith.constant 0 : index
    %c0_1 = arith.constant 0 : index
    %0 = vector.load %arg1[%c0, %c0_0, %c0_1] : memref<1x20x12xf32, #tpu.memory_space<vmem>>, vector<1x20x12xf32>
    %1 = vector.shape_cast %0 : vector<1x20x12xf32> to vector<20x12xf32>
    %cst = arith.constant 0.000000e+00 : f32
    %2 = vector.broadcast %cst : f32 to vector<1x12xf32>
    %3 = tpu.concatenate %2, %1, %2 in 0 : vector<1x12xf32>, vector<20x12xf32>, vector<1x12xf32> -> vector<22x12xf32>
    %4 = vector.extract_strided_slice %3 {offsets = [0, 0], sizes = [18, 12], strides = [1, 1]} : vector<22x12xf32> to vector<18x12xf32>
    %5 = vector.extract_strided_slice %3 {offsets = [1, 0], sizes = [18, 12], strides = [1, 1]} : vector<22x12xf32> to vector<18x12xf32>
    %6 = vector.extract_strided_slice %3 {offsets = [2, 0], sizes = [18, 12], strides = [1, 1]} : vector<22x12xf32> to vector<18x12xf32>
    %7 = vector.extract_strided_slice %3 {offsets = [3, 0], sizes = [18, 12], strides = [1, 1]} : vector<22x12xf32> to vector<18x12xf32>
    %8 = vector.extract_strided_slice %3 {offsets = [4, 0], sizes = [18, 12], strides = [1, 1]} : vector<22x12xf32> to vector<18x12xf32>
    %9 = tpu.concatenate %4, %5, %6, %7, %8 in 1 : vector<18x12xf32>, vector<18x12xf32>, vector<18x12xf32>, vector<18x12xf32>, vector<18x12xf32> -> vector<18x60xf32>
    %c0_2 = arith.constant 0 : index
    %c0_3 = arith.constant 0 : index
    %10 = vector.load %arg2[%c0_2, %c0_3] : memref<60x16xf32, #tpu.memory_space<vmem>>, vector<60x16xf32>
    %cst_4 = arith.constant dense<0.000000e+00> : vector<18x16xf32>
    %11 = tpu.matmul %9, %10, %cst_4 {dimension_numbers = #tpu.dot_dimension_numbers<[1], [0], [0], [1], [0, 0, 1, 1], [], []>} : vector<18x60xf32>, vector<60x16xf32>, vector<18x16xf32> -> vector<18x16xf32>
    %c0_5 = arith.constant 0 : index
    %c0_6 = arith.constant 0 : index
    %12 = vector.load %arg3[%c0_5, %c0_6] : memref<1x16xf32, #tpu.memory_space<vmem>>, vector<1x16xf32>
    %13 = vector.broadcast %12 : vector<1x16xf32> to vector<18x16xf32>
    %14 = arith.addf %11, %13 : vector<18x16xf32>
    %cst_7 = arith.constant 0.000000e+00 : f32
    %15 = vector.broadcast %cst_7 : f32 to vector<18x16xf32>
    %16 = arith.maximumf %14, %15 : vector<18x16xf32>
    %17 = vector.extract_strided_slice %16 {offsets = [0, 0], sizes = [1, 16], strides = [1, 1]} : vector<18x16xf32> to vector<1x16xf32>
    %18 = vector.extract_strided_slice %16 {offsets = [1, 0], sizes = [1, 16], strides = [1, 1]} : vector<18x16xf32> to vector<1x16xf32>
    %19 = arith.maximumf %17, %18 : vector<1x16xf32>
    %20 = vector.extract_strided_slice %16 {offsets = [2, 0], sizes = [1, 16], strides = [1, 1]} : vector<18x16xf32> to vector<1x16xf32>
    %21 = vector.extract_strided_slice %16 {offsets = [3, 0], sizes = [1, 16], strides = [1, 1]} : vector<18x16xf32> to vector<1x16xf32>
    %22 = arith.maximumf %20, %21 : vector<1x16xf32>
    %23 = vector.extract_strided_slice %16 {offsets = [4, 0], sizes = [1, 16], strides = [1, 1]} : vector<18x16xf32> to vector<1x16xf32>
    %24 = vector.extract_strided_slice %16 {offsets = [5, 0], sizes = [1, 16], strides = [1, 1]} : vector<18x16xf32> to vector<1x16xf32>
    %25 = arith.maximumf %23, %24 : vector<1x16xf32>
    %26 = vector.extract_strided_slice %16 {offsets = [6, 0], sizes = [1, 16], strides = [1, 1]} : vector<18x16xf32> to vector<1x16xf32>
    %27 = vector.extract_strided_slice %16 {offsets = [7, 0], sizes = [1, 16], strides = [1, 1]} : vector<18x16xf32> to vector<1x16xf32>
    %28 = arith.maximumf %26, %27 : vector<1x16xf32>
    %29 = vector.extract_strided_slice %16 {offsets = [8, 0], sizes = [1, 16], strides = [1, 1]} : vector<18x16xf32> to vector<1x16xf32>
    %30 = vector.extract_strided_slice %16 {offsets = [9, 0], sizes = [1, 16], strides = [1, 1]} : vector<18x16xf32> to vector<1x16xf32>
    %31 = arith.maximumf %29, %30 : vector<1x16xf32>
    %32 = vector.extract_strided_slice %16 {offsets = [10, 0], sizes = [1, 16], strides = [1, 1]} : vector<18x16xf32> to vector<1x16xf32>
    %33 = vector.extract_strided_slice %16 {offsets = [11, 0], sizes = [1, 16], strides = [1, 1]} : vector<18x16xf32> to vector<1x16xf32>
    %34 = arith.maximumf %32, %33 : vector<1x16xf32>
    %35 = vector.extract_strided_slice %16 {offsets = [12, 0], sizes = [1, 16], strides = [1, 1]} : vector<18x16xf32> to vector<1x16xf32>
    %36 = vector.extract_strided_slice %16 {offsets = [13, 0], sizes = [1, 16], strides = [1, 1]} : vector<18x16xf32> to vector<1x16xf32>
    %37 = arith.maximumf %35, %36 : vector<1x16xf32>
    %38 = vector.extract_strided_slice %16 {offsets = [14, 0], sizes = [1, 16], strides = [1, 1]} : vector<18x16xf32> to vector<1x16xf32>
    %39 = vector.extract_strided_slice %16 {offsets = [15, 0], sizes = [1, 16], strides = [1, 1]} : vector<18x16xf32> to vector<1x16xf32>
    %40 = arith.maximumf %38, %39 : vector<1x16xf32>
    %41 = vector.extract_strided_slice %16 {offsets = [16, 0], sizes = [1, 16], strides = [1, 1]} : vector<18x16xf32> to vector<1x16xf32>
    %42 = vector.extract_strided_slice %16 {offsets = [17, 0], sizes = [1, 16], strides = [1, 1]} : vector<18x16xf32> to vector<1x16xf32>
    %43 = arith.maximumf %41, %42 : vector<1x16xf32>
    %44 = tpu.concatenate %19, %22, %25, %28, %31, %34, %37, %40, %43 in 0 : vector<1x16xf32>, vector<1x16xf32>, vector<1x16xf32>, vector<1x16xf32>, vector<1x16xf32>, vector<1x16xf32>, vector<1x16xf32>, vector<1x16xf32>, vector<1x16xf32> -> vector<9x16xf32>
    %cst_8 = arith.constant 0.000000e+00 : f32
    %45 = vector.broadcast %cst_8 : f32 to vector<1x16xf32>
    %46 = tpu.concatenate %45, %44, %45 in 0 : vector<1x16xf32>, vector<9x16xf32>, vector<1x16xf32> -> vector<11x16xf32>
    %47 = vector.extract_strided_slice %46 {offsets = [0, 0], sizes = [7, 16], strides = [1, 1]} : vector<11x16xf32> to vector<7x16xf32>
    %48 = vector.extract_strided_slice %46 {offsets = [1, 0], sizes = [7, 16], strides = [1, 1]} : vector<11x16xf32> to vector<7x16xf32>
    %49 = vector.extract_strided_slice %46 {offsets = [2, 0], sizes = [7, 16], strides = [1, 1]} : vector<11x16xf32> to vector<7x16xf32>
    %50 = vector.extract_strided_slice %46 {offsets = [3, 0], sizes = [7, 16], strides = [1, 1]} : vector<11x16xf32> to vector<7x16xf32>
    %51 = vector.extract_strided_slice %46 {offsets = [4, 0], sizes = [7, 16], strides = [1, 1]} : vector<11x16xf32> to vector<7x16xf32>
    %52 = tpu.concatenate %47, %48, %49, %50, %51 in 1 : vector<7x16xf32>, vector<7x16xf32>, vector<7x16xf32>, vector<7x16xf32>, vector<7x16xf32> -> vector<7x80xf32>
    %c0_9 = arith.constant 0 : index
    %c0_10 = arith.constant 0 : index
    %53 = vector.load %arg4[%c0_9, %c0_10] : memref<80x32xf32, #tpu.memory_space<vmem>>, vector<80x32xf32>
    %cst_11 = arith.constant dense<0.000000e+00> : vector<7x32xf32>
    %54 = tpu.matmul %52, %53, %cst_11 {dimension_numbers = #tpu.dot_dimension_numbers<[1], [0], [0], [1], [0, 0, 1, 1], [], []>} : vector<7x80xf32>, vector<80x32xf32>, vector<7x32xf32> -> vector<7x32xf32>
    %c0_12 = arith.constant 0 : index
    %c0_13 = arith.constant 0 : index
    %55 = vector.load %arg5[%c0_12, %c0_13] : memref<1x32xf32, #tpu.memory_space<vmem>>, vector<1x32xf32>
    %56 = vector.broadcast %55 : vector<1x32xf32> to vector<7x32xf32>
    %57 = arith.addf %54, %56 : vector<7x32xf32>
    %cst_14 = arith.constant 0.000000e+00 : f32
    %58 = vector.broadcast %cst_14 : f32 to vector<1x32xf32>
    %59 = tpu.concatenate %58, %57, %58 in 0 : vector<1x32xf32>, vector<7x32xf32>, vector<1x32xf32> -> vector<9x32xf32>
    %60 = vector.extract_strided_slice %59 {offsets = [0, 0], sizes = [5, 32], strides = [1, 1]} : vector<9x32xf32> to vector<5x32xf32>
    %61 = vector.extract_strided_slice %59 {offsets = [1, 0], sizes = [5, 32], strides = [1, 1]} : vector<9x32xf32> to vector<5x32xf32>
    %62 = vector.extract_strided_slice %59 {offsets = [2, 0], sizes = [5, 32], strides = [1, 1]} : vector<9x32xf32> to vector<5x32xf32>
    %63 = vector.extract_strided_slice %59 {offsets = [3, 0], sizes = [5, 32], strides = [1, 1]} : vector<9x32xf32> to vector<5x32xf32>
    %64 = vector.extract_strided_slice %59 {offsets = [4, 0], sizes = [5, 32], strides = [1, 1]} : vector<9x32xf32> to vector<5x32xf32>
    %65 = tpu.concatenate %60, %61, %62, %63, %64 in 1 : vector<5x32xf32>, vector<5x32xf32>, vector<5x32xf32>, vector<5x32xf32>, vector<5x32xf32> -> vector<5x160xf32>
    %c0_15 = arith.constant 0 : index
    %c0_16 = arith.constant 0 : index
    %66 = vector.load %arg6[%c0_15, %c0_16] : memref<160x32xf32, #tpu.memory_space<vmem>>, vector<160x32xf32>
    %cst_17 = arith.constant dense<0.000000e+00> : vector<5x32xf32>
    %67 = tpu.matmul %65, %66, %cst_17 {dimension_numbers = #tpu.dot_dimension_numbers<[1], [0], [0], [1], [0, 0, 1, 1], [], []>} : vector<5x160xf32>, vector<160x32xf32>, vector<5x32xf32> -> vector<5x32xf32>
    %c0_18 = arith.constant 0 : index
    %c0_19 = arith.constant 0 : index
    %68 = vector.load %arg7[%c0_18, %c0_19] : memref<1x32xf32, #tpu.memory_space<vmem>>, vector<1x32xf32>
    %69 = vector.broadcast %68 : vector<1x32xf32> to vector<5x32xf32>
    %70 = arith.addf %67, %69 : vector<5x32xf32>
    %cst_20 = arith.constant 0.000000e+00 : f32
    %71 = vector.broadcast %cst_20 : f32 to vector<5x32xf32>
    %72 = arith.maximumf %70, %71 : vector<5x32xf32>
    %73 = vector.extract_strided_slice %72 {offsets = [0, 0], sizes = [1, 32], strides = [1, 1]} : vector<5x32xf32> to vector<1x32xf32>
    %74 = vector.extract_strided_slice %72 {offsets = [1, 0], sizes = [1, 32], strides = [1, 1]} : vector<5x32xf32> to vector<1x32xf32>
    %75 = vector.extract_strided_slice %72 {offsets = [2, 0], sizes = [1, 32], strides = [1, 1]} : vector<5x32xf32> to vector<1x32xf32>
    %76 = vector.extract_strided_slice %72 {offsets = [3, 0], sizes = [1, 32], strides = [1, 1]} : vector<5x32xf32> to vector<1x32xf32>
    %77 = vector.extract_strided_slice %72 {offsets = [4, 0], sizes = [1, 32], strides = [1, 1]} : vector<5x32xf32> to vector<1x32xf32>
    %78 = tpu.concatenate %73, %74, %75, %76, %77 in 1 : vector<1x32xf32>, vector<1x32xf32>, vector<1x32xf32>, vector<1x32xf32>, vector<1x32xf32> -> vector<1x160xf32>
    %c0_21 = arith.constant 0 : index
    %c0_22 = arith.constant 0 : index
    %79 = vector.load %arg8[%c0_21, %c0_22] : memref<160x192xf32, #tpu.memory_space<vmem>>, vector<160x192xf32>
    %cst_23 = arith.constant dense<0.000000e+00> : vector<1x192xf32>
    %80 = tpu.matmul %78, %79, %cst_23 {dimension_numbers = #tpu.dot_dimension_numbers<[1], [0], [0], [1], [0, 0, 1, 1], [], []>} : vector<1x160xf32>, vector<160x192xf32>, vector<1x192xf32> -> vector<1x192xf32>
    %c0_24 = arith.constant 0 : index
    %c0_25 = arith.constant 0 : index
    %81 = vector.load %arg9[%c0_24, %c0_25] : memref<1x192xf32, #tpu.memory_space<vmem>>, vector<1x192xf32>
    %82 = arith.addf %80, %81 : vector<1x192xf32>
    %cst_26 = arith.constant 0.000000e+00 : f32
    %83 = vector.broadcast %cst_26 : f32 to vector<1x192xf32>
    %84 = arith.maximumf %82, %83 : vector<1x192xf32>
    %85 = vector.extract_strided_slice %84 {offsets = [0, 0], sizes = [1, 64], strides = [1, 1]} : vector<1x192xf32> to vector<1x64xf32>
    %86 = vector.extract_strided_slice %84 {offsets = [0, 64], sizes = [1, 64], strides = [1, 1]} : vector<1x192xf32> to vector<1x64xf32>
    %87 = vector.extract_strided_slice %84 {offsets = [0, 128], sizes = [1, 64], strides = [1, 1]} : vector<1x192xf32> to vector<1x64xf32>
    %88 = tpu.concatenate %85, %86, %87 in 0 : vector<1x64xf32>, vector<1x64xf32>, vector<1x64xf32> -> vector<3x64xf32>
    %cst_27 = arith.constant 0.000000e+00 : f32
    %89 = vector.broadcast %cst_27 : f32 to vector<3x64xf32>
    %90 = tpu.concatenate %89, %88, %89 in 0 : vector<3x64xf32>, vector<3x64xf32>, vector<3x64xf32> -> vector<9x64xf32>
    %91 = vector.extract_strided_slice %90 {offsets = [0, 0], sizes = [5, 64], strides = [1, 1]} : vector<9x64xf32> to vector<5x64xf32>
    %92 = vector.extract_strided_slice %90 {offsets = [1, 0], sizes = [5, 64], strides = [1, 1]} : vector<9x64xf32> to vector<5x64xf32>
    %93 = vector.extract_strided_slice %90 {offsets = [2, 0], sizes = [5, 64], strides = [1, 1]} : vector<9x64xf32> to vector<5x64xf32>
    %94 = vector.extract_strided_slice %90 {offsets = [3, 0], sizes = [5, 64], strides = [1, 1]} : vector<9x64xf32> to vector<5x64xf32>
    %95 = vector.extract_strided_slice %90 {offsets = [4, 0], sizes = [5, 64], strides = [1, 1]} : vector<9x64xf32> to vector<5x64xf32>
    %96 = tpu.concatenate %91, %92, %93, %94, %95 in 1 : vector<5x64xf32>, vector<5x64xf32>, vector<5x64xf32>, vector<5x64xf32>, vector<5x64xf32> -> vector<5x320xf32>
    %c0_28 = arith.constant 0 : index
    %c0_29 = arith.constant 0 : index
    %97 = vector.load %arg10[%c0_28, %c0_29] : memref<320x32xf32, #tpu.memory_space<vmem>>, vector<320x32xf32>
    %cst_30 = arith.constant dense<0.000000e+00> : vector<5x32xf32>
    %98 = tpu.matmul %96, %97, %cst_30 {dimension_numbers = #tpu.dot_dimension_numbers<[1], [0], [0], [1], [0, 0, 1, 1], [], []>} : vector<5x320xf32>, vector<320x32xf32>, vector<5x32xf32> -> vector<5x32xf32>
    %c0_31 = arith.constant 0 : index
    %c0_32 = arith.constant 0 : index
    %99 = vector.load %arg11[%c0_31, %c0_32] : memref<1x32xf32, #tpu.memory_space<vmem>>, vector<1x32xf32>
    %100 = vector.broadcast %99 : vector<1x32xf32> to vector<5x32xf32>
    %101 = arith.addf %98, %100 : vector<5x32xf32>
    %cst_33 = arith.constant 0.000000e+00 : f32
    %102 = vector.broadcast %cst_33 : f32 to vector<5x32xf32>
    %103 = arith.maximumf %101, %102 : vector<5x32xf32>
    %cst_34 = arith.constant 0.000000e+00 : f32
    %104 = vector.broadcast %cst_34 : f32 to vector<3x32xf32>
    %105 = tpu.concatenate %104, %103, %104 in 0 : vector<3x32xf32>, vector<5x32xf32>, vector<3x32xf32> -> vector<11x32xf32>
    %106 = vector.extract_strided_slice %105 {offsets = [0, 0], sizes = [7, 32], strides = [1, 1]} : vector<11x32xf32> to vector<7x32xf32>
    %107 = vector.extract_strided_slice %105 {offsets = [1, 0], sizes = [7, 32], strides = [1, 1]} : vector<11x32xf32> to vector<7x32xf32>
    %108 = vector.extract_strided_slice %105 {offsets = [2, 0], sizes = [7, 32], strides = [1, 1]} : vector<11x32xf32> to vector<7x32xf32>
    %109 = vector.extract_strided_slice %105 {offsets = [3, 0], sizes = [7, 32], strides = [1, 1]} : vector<11x32xf32> to vector<7x32xf32>
    %110 = vector.extract_strided_slice %105 {offsets = [4, 0], sizes = [7, 32], strides = [1, 1]} : vector<11x32xf32> to vector<7x32xf32>
    %111 = tpu.concatenate %106, %107, %108, %109, %110 in 1 : vector<7x32xf32>, vector<7x32xf32>, vector<7x32xf32>, vector<7x32xf32>, vector<7x32xf32> -> vector<7x160xf32>
    %c0_35 = arith.constant 0 : index
    %c0_36 = arith.constant 0 : index
    %112 = vector.load %arg12[%c0_35, %c0_36] : memref<160x16xf32, #tpu.memory_space<vmem>>, vector<160x16xf32>
    %cst_37 = arith.constant dense<0.000000e+00> : vector<7x16xf32>
    %113 = tpu.matmul %111, %112, %cst_37 {dimension_numbers = #tpu.dot_dimension_numbers<[1], [0], [0], [1], [0, 0, 1, 1], [], []>} : vector<7x160xf32>, vector<160x16xf32>, vector<7x16xf32> -> vector<7x16xf32>
    %c0_38 = arith.constant 0 : index
    %c0_39 = arith.constant 0 : index
    %114 = vector.load %arg13[%c0_38, %c0_39] : memref<1x16xf32, #tpu.memory_space<vmem>>, vector<1x16xf32>
    %115 = vector.broadcast %114 : vector<1x16xf32> to vector<7x16xf32>
    %116 = arith.addf %113, %115 : vector<7x16xf32>
    %cst_40 = arith.constant 0.000000e+00 : f32
    %117 = vector.broadcast %cst_40 : f32 to vector<7x16xf32>
    %118 = arith.maximumf %116, %117 : vector<7x16xf32>
    %cst_41 = arith.constant 0.000000e+00 : f32
    %119 = vector.broadcast %cst_41 : f32 to vector<3x16xf32>
    %120 = tpu.concatenate %119, %118, %119 in 0 : vector<3x16xf32>, vector<7x16xf32>, vector<3x16xf32> -> vector<13x16xf32>
    %121 = vector.extract_strided_slice %120 {offsets = [0, 0], sizes = [9, 16], strides = [1, 1]} : vector<13x16xf32> to vector<9x16xf32>
    %122 = vector.extract_strided_slice %120 {offsets = [1, 0], sizes = [9, 16], strides = [1, 1]} : vector<13x16xf32> to vector<9x16xf32>
    %123 = vector.extract_strided_slice %120 {offsets = [2, 0], sizes = [9, 16], strides = [1, 1]} : vector<13x16xf32> to vector<9x16xf32>
    %124 = vector.extract_strided_slice %120 {offsets = [3, 0], sizes = [9, 16], strides = [1, 1]} : vector<13x16xf32> to vector<9x16xf32>
    %125 = vector.extract_strided_slice %120 {offsets = [4, 0], sizes = [9, 16], strides = [1, 1]} : vector<13x16xf32> to vector<9x16xf32>
    %126 = tpu.concatenate %121, %122, %123, %124, %125 in 1 : vector<9x16xf32>, vector<9x16xf32>, vector<9x16xf32>, vector<9x16xf32>, vector<9x16xf32> -> vector<9x80xf32>
    %c0_42 = arith.constant 0 : index
    %c0_43 = arith.constant 0 : index
    %127 = vector.load %arg14[%c0_42, %c0_43] : memref<80x11xf32, #tpu.memory_space<vmem>>, vector<80x11xf32>
    %cst_44 = arith.constant dense<0.000000e+00> : vector<9x11xf32>
    %128 = tpu.matmul %126, %127, %cst_44 {dimension_numbers = #tpu.dot_dimension_numbers<[1], [0], [0], [1], [0, 0, 1, 1], [], []>} : vector<9x80xf32>, vector<80x11xf32>, vector<9x11xf32> -> vector<9x11xf32>
    %c0_45 = arith.constant 0 : index
    %c0_46 = arith.constant 0 : index
    %129 = vector.load %arg15[%c0_45, %c0_46] : memref<1x11xf32, #tpu.memory_space<vmem>>, vector<1x11xf32>
    %130 = vector.broadcast %129 : vector<1x11xf32> to vector<9x11xf32>
    %131 = arith.addf %128, %130 : vector<9x11xf32>
    %cst_47 = arith.constant 5.000000e-01 : f32
    %132 = vector.broadcast %cst_47 : f32 to vector<9x11xf32>
    %133 = arith.mulf %132, %131 : vector<9x11xf32>
    %134 = math.tanh %133 : vector<9x11xf32>
    %cst_48 = arith.constant 1.000000e+00 : f32
    %135 = vector.broadcast %cst_48 : f32 to vector<9x11xf32>
    %136 = arith.addf %134, %135 : vector<9x11xf32>
    %cst_49 = arith.constant 5.000000e-01 : f32
    %137 = vector.broadcast %cst_49 : f32 to vector<9x11xf32>
    %138 = arith.mulf %137, %136 : vector<9x11xf32>
    %139 = vector.extract_strided_slice %138 {offsets = [0, 0], sizes = [1, 11], strides = [1, 1]} : vector<9x11xf32> to vector<1x11xf32>
    %140 = vector.extract_strided_slice %138 {offsets = [1, 0], sizes = [1, 11], strides = [1, 1]} : vector<9x11xf32> to vector<1x11xf32>
    %141 = vector.extract_strided_slice %138 {offsets = [2, 0], sizes = [1, 11], strides = [1, 1]} : vector<9x11xf32> to vector<1x11xf32>
    %142 = vector.extract_strided_slice %138 {offsets = [3, 0], sizes = [1, 11], strides = [1, 1]} : vector<9x11xf32> to vector<1x11xf32>
    %143 = vector.extract_strided_slice %138 {offsets = [4, 0], sizes = [1, 11], strides = [1, 1]} : vector<9x11xf32> to vector<1x11xf32>
    %144 = vector.extract_strided_slice %138 {offsets = [5, 0], sizes = [1, 11], strides = [1, 1]} : vector<9x11xf32> to vector<1x11xf32>
    %145 = vector.extract_strided_slice %138 {offsets = [6, 0], sizes = [1, 11], strides = [1, 1]} : vector<9x11xf32> to vector<1x11xf32>
    %146 = vector.extract_strided_slice %138 {offsets = [7, 0], sizes = [1, 11], strides = [1, 1]} : vector<9x11xf32> to vector<1x11xf32>
    %147 = vector.extract_strided_slice %138 {offsets = [8, 0], sizes = [1, 11], strides = [1, 1]} : vector<9x11xf32> to vector<1x11xf32>
    %148 = tpu.concatenate %139, %140, %141, %142, %143, %144, %145, %146, %147 in 1 : vector<1x11xf32>, vector<1x11xf32>, vector<1x11xf32>, vector<1x11xf32>, vector<1x11xf32>, vector<1x11xf32>, vector<1x11xf32>, vector<1x11xf32>, vector<1x11xf32> -> vector<1x99xf32>
    %c0_50 = arith.constant 0 : index
    %c0_51 = arith.constant 0 : index
    %149 = vector.load %arg16[%c0_50, %c0_51] : memref<99x128xf32, #tpu.memory_space<vmem>>, vector<99x128xf32>
    %cst_52 = arith.constant dense<0.000000e+00> : vector<1x128xf32>
    %150 = tpu.matmul %148, %149, %cst_52 {dimension_numbers = #tpu.dot_dimension_numbers<[1], [0], [0], [1], [0, 0, 1, 1], [], []>} : vector<1x99xf32>, vector<99x128xf32>, vector<1x128xf32> -> vector<1x128xf32>
    %c0_53 = arith.constant 0 : index
    %c0_54 = arith.constant 0 : index
    %151 = vector.load %arg17[%c0_53, %c0_54] : memref<1x128xf32, #tpu.memory_space<vmem>>, vector<1x128xf32>
    %152 = arith.addf %150, %151 : vector<1x128xf32>
    %c0_55 = arith.constant 0 : index
    %c0_56 = arith.constant 0 : index
    %c0_57 = arith.constant 0 : index
    %153 = vector.load %arg18[%c0_55, %c0_56, %c0_57] : memref<1x1x128xf32, #tpu.memory_space<vmem>>, vector<1x1x128xf32>
    %154 = vector.shape_cast %153 : vector<1x1x128xf32> to vector<1x128xf32>
    %155 = vector.shape_cast %152 : vector<1x128xf32> to vector<1x1x128xf32>
    tpu.vector_store %arg18[%c0_55, %c0_56, %c0_57], %155 {strides = array<i32>} : memref<1x1x128xf32, #tpu.memory_space<vmem>>, vector<1x1x128xf32>,
    return
  }
  func.func @transform_0(%arg0: i32) -> (i32, i32, i32) {
    %c0_i32 = arith.constant 0 : i32
    %c0_i32_0 = arith.constant 0 : i32
    %c0_i32_1 = arith.constant 0 : i32
    return %arg0, %c0_i32, %c0_i32_0 : i32, i32, i32
  }
  func.func @transform_1(%arg0: i32) -> (i32, i32) {
    %c0_i32 = arith.constant 0 : i32
    %c0_i32_0 = arith.constant 0 : i32
    %c0_i32_1 = arith.constant 0 : i32
    return %c0_i32, %c0_i32_0 : i32, i32
  }
  func.func @transform_2(%arg0: i32) -> (i32, i32) {
    %c0_i32 = arith.constant 0 : i32
    %c0_i32_0 = arith.constant 0 : i32
    %c0_i32_1 = arith.constant 0 : i32
    return %c0_i32, %c0_i32_0 : i32, i32
  }
  func.func @transform_3(%arg0: i32) -> (i32, i32) {
    %c0_i32 = arith.constant 0 : i32
    %c0_i32_0 = arith.constant 0 : i32
    %c0_i32_1 = arith.constant 0 : i32
    return %c0_i32, %c0_i32_0 : i32, i32
  }
  func.func @transform_4(%arg0: i32) -> (i32, i32) {
    %c0_i32 = arith.constant 0 : i32
    %c0_i32_0 = arith.constant 0 : i32
    %c0_i32_1 = arith.constant 0 : i32
    return %c0_i32, %c0_i32_0 : i32, i32
  }
  func.func @transform_5(%arg0: i32) -> (i32, i32) {
    %c0_i32 = arith.constant 0 : i32
    %c0_i32_0 = arith.constant 0 : i32
    %c0_i32_1 = arith.constant 0 : i32
    return %c0_i32, %c0_i32_0 : i32, i32
  }
  func.func @transform_6(%arg0: i32) -> (i32, i32) {
    %c0_i32 = arith.constant 0 : i32
    %c0_i32_0 = arith.constant 0 : i32
    %c0_i32_1 = arith.constant 0 : i32
    return %c0_i32, %c0_i32_0 : i32, i32
  }
  func.func @transform_7(%arg0: i32) -> (i32, i32) {
    %c0_i32 = arith.constant 0 : i32
    %c0_i32_0 = arith.constant 0 : i32
    %c0_i32_1 = arith.constant 0 : i32
    return %c0_i32, %c0_i32_0 : i32, i32
  }
  func.func @transform_8(%arg0: i32) -> (i32, i32) {
    %c0_i32 = arith.constant 0 : i32
    %c0_i32_0 = arith.constant 0 : i32
    %c0_i32_1 = arith.constant 0 : i32
    return %c0_i32, %c0_i32_0 : i32, i32
  }
  func.func @transform_9(%arg0: i32) -> (i32, i32) {
    %c0_i32 = arith.constant 0 : i32
    %c0_i32_0 = arith.constant 0 : i32
    %c0_i32_1 = arith.constant 0 : i32
    return %c0_i32, %c0_i32_0 : i32, i32
  }
  func.func @transform_10(%arg0: i32) -> (i32, i32) {
    %c0_i32 = arith.constant 0 : i32
    %c0_i32_0 = arith.constant 0 : i32
    %c0_i32_1 = arith.constant 0 : i32
    return %c0_i32, %c0_i32_0 : i32, i32
  }
  func.func @transform_11(%arg0: i32) -> (i32, i32) {
    %c0_i32 = arith.constant 0 : i32
    %c0_i32_0 = arith.constant 0 : i32
    %c0_i32_1 = arith.constant 0 : i32
    return %c0_i32, %c0_i32_0 : i32, i32
  }
  func.func @transform_12(%arg0: i32) -> (i32, i32) {
    %c0_i32 = arith.constant 0 : i32
    %c0_i32_0 = arith.constant 0 : i32
    %c0_i32_1 = arith.constant 0 : i32
    return %c0_i32, %c0_i32_0 : i32, i32
  }
  func.func @transform_13(%arg0: i32) -> (i32, i32) {
    %c0_i32 = arith.constant 0 : i32
    %c0_i32_0 = arith.constant 0 : i32
    %c0_i32_1 = arith.constant 0 : i32
    return %c0_i32, %c0_i32_0 : i32, i32
  }
  func.func @transform_14(%arg0: i32) -> (i32, i32) {
    %c0_i32 = arith.constant 0 : i32
    %c0_i32_0 = arith.constant 0 : i32
    %c0_i32_1 = arith.constant 0 : i32
    return %c0_i32, %c0_i32_0 : i32, i32
  }
  func.func @transform_15(%arg0: i32) -> (i32, i32) {
    %c0_i32 = arith.constant 0 : i32
    %c0_i32_0 = arith.constant 0 : i32
    %c0_i32_1 = arith.constant 0 : i32
    return %c0_i32, %c0_i32_0 : i32, i32
  }
  func.func @transform_16(%arg0: i32) -> (i32, i32) {
    %c0_i32 = arith.constant 0 : i32
    %c0_i32_0 = arith.constant 0 : i32
    %c0_i32_1 = arith.constant 0 : i32
    return %c0_i32, %c0_i32_0 : i32, i32
  }
  func.func @transform_17(%arg0: i32) -> (i32, i32, i32) {
    %c0_i32 = arith.constant 0 : i32
    %c0_i32_0 = arith.constant 0 : i32
    %c0_i32_1 = arith.constant 0 : i32
    return %arg0, %c0_i32, %c0_i32_0 : i32, i32, i32
  }
}

</mosaic_0001>

<bundles_post_ra>
// kernel: tile.8
= control target key start
LH: loop header
LB: loop body
LE: loop exit
PB: predicated region body
PF: predicated region fallthrough
CT: control target
= control target key end

     0   :  { %s22_s0 = inlined_call_operand.vmem [shape: f32[64], index: 0, kind: input, shape index: {}]   ;;  %s23_s1 = inlined_call_operand.vmem [shape: f32[3,64], index: 1, kind: output, shape index: {}]  }
   0x1   :  { %v4_v0 = vld [vmem:[%s22_s0] ss:$0 sm:$0xff] }
   0x2   :  { %5 = vst [vmem:[%s23_s1] sm:$0xf] %v4_v0 }

// kernel: tile.9
= control target key start
LH: loop header
LB: loop body
LE: loop exit
PB: predicated region body
PF: predicated region fallthrough
CT: control target
= control target key end

     0   :  { %vm8_vm0 = vcmask 523264   ;;  %s29_s8 = smov 64   ;;  %vm14_vm1 = vcmask 1048064   ;;  %s49_s0 = inlined_call_operand.vmem [shape: f32[3,64], index: 0, kind: input, shape index: {}]   ;;  %s50_s1 = inlined_call_operand.vmem [shape: f32[1,192], index: 1, kind: output, shape index: {}]  }
   0x1   :  { %v4_v0 = vld [vmem:[%s49_s0] sm:$0xf]  ;;  %s6_s0 = smov 3 }
   0x2   :  { %5 = vst [vmem:[#allocation1] sm:$0xf] %v4_v0 }
   0x9   :  { %v11_v1 = vld [vmem:[#allocation1 + $0x1] sm:$0x1]   ;;  %v7_v2 = vld [vmem:[#allocation1] ss:$2 sm:%s6_s0]  }
   0xa   :  { %12 = vrot.lane.b32.xlu0 %v11_v1, %s29_s8  ;;  %9 = vst.msk [vmem:[#allocation0] ss:$8 sm:$0x3] %vm8_vm0, %v7_v2  }
  0x11   :  { %v23_v3 = vld [vmem:[#allocation0 + $0x8] sm:$0x1] }
  0x12   :  { %27 = vst [vmem:[%s50_s1 + $0x1] sm:$0x1] %v23_v3 }
  0x7c   :  { %v13_v4 = vpop.permute.xlu0 %12  }
  0x7d   :  { %15 = vst.msk [vmem:[#allocation0] sm:$0x1] %vm14_vm1, %v13_v4  }
  0x84   :  { %v19_v5 = vld [vmem:[#allocation0] sm:$0x1] }
  0x85   :  { %21 = vst [vmem:[%s50_s1] sm:$0x1] %v19_v5 }

// kernel: autoencoder_forward.1
= control target key start
LH: loop header
LB: loop body
LE: loop exit
PB: predicated region body
PF: predicated region fallthrough
CT: control target
= control target key end

     0   :  { %s3400_s0 = inlined_call_operand.vmem [shape: f32[2,20,12], index: 0, kind: input, shape index: {}]   ;;  %s3401_s1 = inlined_call_operand.vmem [shape: f32[60,16], index: 1, kind: input, shape index: {}]   ;;  %s3402_s2 = inlined_call_operand.vmem [shape: f32[1,16], index: 2, kind: input, shape index: {}]   ;;  %s3403_s3 = inlined_call_operand.vmem [shape: f32[80,32], index: 3, kind: input, shape index: {}]   ;;  %s3404_s4 = inlined_call_operand.vmem [shape: f32[1,32], index: 4, kind: input, shape index: {}]   ;;  %s3405_s5 = inlined_call_operand.vmem [shape: f32[160,32], index: 5, kind: input, shape index: {}]   ;;  %s3406_s6 = inlined_call_operand.vmem [shape: f32[1,32], index: 6, kind: input, shape index: {}]   ;;  %s3407_s7 = inlined_call_operand.vmem [shape: f32[160,192], index: 7, kind: input, shape index: {}]   ;;  %s3408_s8 = inlined_call_operand.vmem [shape: f32[1,192], index: 8, kind: input, shape index: {}]   ;;  %s3409_s9 = inlined_call_operand.vmem [shape: f32[320,32], index: 9, kind: input, shape index: {}]   ;;  %s3410_s10 = inlined_call_operand.vmem [shape: f32[1,32], index: 10, kind: input, shape index: {}]   ;;  %s3411_s11 = inlined_call_operand.vmem [shape: f32[160,16], index: 11, kind: input, shape index: {}]   ;;  %s3412_s12 = inlined_call_operand.vmem [shape: f32[1,16], index: 12, kind: input, shape index: {}]   ;;  %s3413_s13 = inlined_call_operand.vmem [shape: f32[80,11], index: 13, kind: input, shape index: {}]   ;;  %s3414_s14 = inlined_call_operand.vmem [shape: f32[1,11], index: 14, kind: input, shape index: {}]   ;;  %s3415_s15 = inlined_call_operand.vmem [shape: f32[99,128], index: 15, kind: input, shape index: {}]   ;;  %s3416_s16 = inlined_call_operand.vmem [shape: f32[1,128], index: 16, kind: input, shape index: {}]   ;;  %s3417_s17 = inlined_call_operand.hbm [shape: f32[2,1,128], index: 17, kind: output, shape index: {}]  }
   0x1   :  { %3432 = sst [smem:[#allocation11_spill]] %s3400_s0 }
   0x2   :  { %3433 = sst [smem:[#allocation12_spill]] %s3401_s1 }
   0x3   :  { %3434 = sst [smem:[#allocation13_spill]] %s3416_s16 }
   0x4   :  { %3435 = sst [smem:[#allocation14_spill]] %s3417_s17 }
   0x5   :  { %22 = vsyncpa [#allocation3], 0 }
   0x6   :  { %24 = vsyncpa [#allocation3 + $0x1], 0  ;;  %s2593_s24 = smov 0   ;;  %s2595_s25 = smov 0  }
   0x7   :  { %s2597_s26 = smov 0   ;;  %s2599_s27 = smov 0  }
   0x8 LB: > { %3436 = sst [smem:[#allocation5_spill]] %s2468_s24  ;;  %s2614_s28 = sadd.s32 4294967295, %s2480_s27   ;;  %s2480_s27 = sphi %s2599_s27, %s3454_s27   ;;  %s2476_s26 = sphi %s2597_s26, %s3456_s26   ;;  %s2472_s25 = sphi %s2595_s25, %s3458_s25   ;;  %s2468_s24 = sphi %s2593_s24, %s3457_s24  }
   0x9   : > { %3437 = sst [smem:[#allocation6_spill]] %s2476_s26  ;;  %s1901_s29 = sadd.s32 4294967294, %s2480_s27  }
   0xa   : > { %3438 = sst [smem:[#allocation7_spill]] %s2480_s27  ;;  %s2618_s0 = sadd.s32 1, %s2480_s27  }
   0xb   : > { %3439 = sst [smem:[#allocation8_spill]] %s2618_s0  ;;  %s399_s30 = sadd.s32 1, %s2476_s26 }
   0xc   : > { %s396_s18 = ssub.s32 %s2480_s27, %s2618_s0  ;;  %p409_p0 = scmp.ne.s32.totalorder %s2476_s26, %s2472_s25 }
   0xd   : > { %p397_p1 = scmp.eq.s32.totalorder %s396_s18, 0  ;;  %p410_p2 = scmp.eq.s32.totalorder %s2614_s28, 1 }
   0xe   : > { %p415_p3 = scmp.ne.s32.totalorder %s2472_s25, %s2468_s24  ;;  %p416_p4 = scmp.eq.s32.totalorder %s1901_s29, 1 }
   0xf   : > { %s2629_s19 = scalar_select %p397_p1, %s2476_s26, %s399_s30  }
  0x10   : > { %p2631_p5 = por %p410_p2, %p409_p0  ;;  %p2635_p6 = por %p416_p4, %p415_p3 }
  0x11   : > { %3440 = sst [smem:[#allocation9_spill]] %s2629_s19  ;;  %p1904_p7 = scmp.ge.s32.totalorder %s2480_s27, 1 }
  0x12   : > { %s3442_s20 = scalar_select %p2635_p6, 1, 0 }
  0x13   : > { %p490_p8 = scmp.lt.s32.totalorder %s2480_s27, 3 }
  0x14   : > { %3443 = sst [smem:[#allocation10_spill]] %s3442_s20 }
  0x15   : > { %p491_p9 = pnand %p1904_p7, %p490_p8 }
  0x16   : > { %p541_p10 = scmp.lt.s32.totalorder (!%p491_p9), %s2614_s28, 1  ;;  %s3444_s23 = sld [smem:[#allocation12_spill]] (!%p491_p9)  ;;  %v2482_v2 = vmov (!%p491_p9), 0.0|0.0   ;;  %vm552_vm0 = vcmask (!%p491_p9), 1040384   ;;  %vm566_vm1 = vcmask (!%p491_p9), 1046528   ;;  %vm2483_vm2 = vmmov (!%p491_p9), 0  }
  0x17   : > { %494 = sbr.rel (%p491_p9) target bundleno = 2954 (0xb8a), region = 88  ;;  %2139 = vmatprep.subr.bf16.mxu1 (!%p491_p9), %v2482_v2  ;;  %2167 = vmatprep.subr.bf16.mxu0 (!%p491_p9), %v2482_v2  ;;  %s3445_s27 = sld [smem:[#allocation11_spill]] (!%p491_p9)  ;;  %v2484_v14 = vmov (!%p491_p9), 0.0   ;;  %vm562_vm3 = vcmask (!%p491_p9), 1044480   ;;  %vm581_vm4 = vcmask (!%p491_p9), 1045504   ;;  %vm610_vm5 = vcmask (!%p491_p9), 1043456  }
  0x18   : > { %2036 = vmatprep.mubr.msk.f32.mxu1 (!%p491_p9), %vm2483_vm2, %v2484_v14  ;;  %vm2485_vm6 = vmmov (!%p491_p9), 1   ;;  %s2486_s16 = smov (!%p491_p9), 12   ;;  %s2487_s17 = smov (!%p491_p9), 36   ;;  %vm625_vm8 = vcmask (!%p491_p9), 97280   ;;  %vm629_vm9 = vcmask (!%p491_p9), 195584   ;;  %vm633_vm10 = vcmask (!%p491_p9), 293888  }
  0x19   : > { %vm2150_vm7 = vmpackc.low (!%p491_p9), %vm610_vm5, %vm2485_vm6  ;;  %s2488_s24 = smov (!%p491_p9), 24   ;;  %vm637_vm11 = vcmask (!%p491_p9), 392192   ;;  %vm656_vm12 = vcmask (!%p491_p9), 490496   ;;  %vm781_vm13 = vcmask (!%p491_p9), 1041408   ;;  %vm783_vm14 = vcmask (!%p491_p9), 1042432   ;;  %s3430_s20 = smov (!%p491_p9), 96  }
  0x1a   : > { %vm822_vm15 = vcmask (!%p491_p9), 130048   ;;  %vm824_vm6 = vcmask (!%p491_p9), 261120   ;;  %s3446_s26 = smov (!%p491_p9), 96   ;;  %s2496_s29 = smov (!%p491_p9), 44  }
  0x1b   : > { %s2498_s30 = smov (!%p491_p9), 66   ;;  %s2499_s19 = smov (!%p491_p9), 55  }
  0x1c   : > { %v641_v0 = vld [vmem:[%s3444_s23] sm:$0xff] (!%p491_p9)  ;;  %v642_v1 = vld [vmem:[%s3444_s23 + $0x8] sm:$0xff] (!%p491_p9)  ;;  %v643_v4 = vld [vmem:[%s3444_s23 + $0x10] sm:$0xff] (!%p491_p9) }
  0x1d   : > { %v2140_v3 = vpack.c.bf16 (!%p491_p9), %v642_v1, %v641_v0  ;;  %v644_v5 = vld [vmem:[%s3444_s23 + $0x18] sm:$0xff] (!%p491_p9)  ;;  %v645_v7 = vld [vmem:[%s3444_s23 + $0x20] sm:$0xff] (!%p491_p9)  ;;  %v646_v8 = vld [vmem:[%s3444_s23 + $0x28] sm:$0xff] (!%p491_p9) }
  0x1e   : > { %s542_s18 = scalar_select %p541_p10, %s2614_s28, 1  ;;  %v2143_v6 = vpack.c.bf16 %v644_v5, %v643_v4  ;;  %v647_v9 = vld [vmem:[%s3444_s23 + $0x30] sm:$0xff]  ;;  %v648_v10 = vld [vmem:[%s3444_s23 + $0x38] sm:$0xf]  ;;  %v2146_v18 = vpack.c.bf16 %v646_v8, %v645_v7  ;;  %v829_v5 = vld [vmem:[%s3403_s3] sm:$0xff] }
  0x1f   : > { %2141 = vmatpush3.bf16.msra.mxu1 %v2140_v3  ;;  %v2149_v22 = vpack.c.bf16 %v648_v10, %v647_v9  ;;  %v831_v7 = vld [vmem:[%s3403_s3 + $0x10] sm:$0xff]  ;;  %v832_v9 = vld [vmem:[%s3403_s3 + $0x18] sm:$0xff] }
  0x20   : > { %s2349_s21 = smul.u32 24, %s542_s18  ;;  %2142 = vmatprep.subr.bf16.mxu1 %v2482_v2  ;;  %v2156_v10 = vpack.c.bf16 %v832_v9, %v831_v7  ;;  %s3448_s18 = smov 48  }
  0x22   : > { %s545_s0 = scalar_lea.vmem %s3445_s27, %s2349_s21  ;;  %s3426_s27 = smov 48  }
  0x23   : > { %v546_v11 = vld [vmem:[%s545_s0] sm:$0xff]  ;;  %v547_v12 = vld [vmem:[%s545_s0 + $0x8] sm:$0xff]  ;;  %v548_v13 = vld [vmem:[%s545_s0 + $0x10] sm:$0xf]  ;;  %2144 = vmatpush3.bf16.msra.mxu1 %v2143_v6  ;;  %s2492_s21 = smov 64   ;;  %s3447_s0 = smov 16  }
  0x24   : > { %v553_v15 = vrot.slane %v546_v11, 7  ;;  %v554_v16 = vrot.slane %v547_v12, 7  ;;  %v556_v17 = vrot.slane %v548_v13, 7  ;;  %2145 = vmatprep.subr.bf16.mxu1 %v2482_v2  ;;  %v830_v6 = vld [vmem:[%s3403_s3 + $0x8] sm:$0xff]  ;;  %v833_v11 = vld [vmem:[%s3403_s3 + $0x20] sm:$0xff] }
  0x25   : > { %v2153_v8 = vpack.c.bf16 %v830_v6, %v829_v5  ;;  %v834_v12 = vld [vmem:[%s3403_s3 + $0x28] sm:$0xff] }
  0x26   : > { %v2677_v19 = vsel %vm552_vm0, %v553_v15, %v554_v16  ;;  %v561_v20 = vsel %vm552_vm0, 0.0, %v553_v15  ;;  %v557_v21 = vsel %vm552_vm0, %v554_v16, %v556_v17  ;;  %v2159_v13 = vpack.c.bf16 %v834_v12, %v833_v11  ;;  %v1906_v15 = vld [vmem:[%s3402_s2] ss:$0 sm:$0xff] }
  0x27   : > { %v567_v23 = vrot.slane %v561_v20, 1  ;;  %v568_v24 = vrot.slane %v2677_v19, 1  ;;  %v596_v25 = vrot.slane %v561_v20, 3  ;;  %v597_v26 = vrot.slane %v2677_v19, 3  ;;  %2147 = vmatpush3.bf16.msra.mxu1 %v2146_v18 }
  0x28   : > { %v582_v27 = vrot.slane %v561_v20, 2  ;;  %v583_v28 = vrot.slane %v2677_v19, 2  ;;  %v611_v29 = vrot.slane %v561_v20, 4  ;;  %v612_v30 = vrot.slane %v2677_v19, 4  ;;  %2148 = vmatprep.subr.bf16.mxu1 %v2482_v2 }
  0x29   : > { %v569_v31 = vsel %vm566_vm1, %v567_v23, %v568_v24  ;;  %v598_v32 = vsel %vm562_vm3, %v596_v25, %v597_v26  ;;  %v563_v33 = vsel %vm562_vm3, %v557_v21, 0.0 }
  0x2a   : > { %572 = vrot.lane.b32.xlu0 %v569_v31, %s2486_s16  ;;  %601 = vrot.lane.b32.xlu1 %v598_v32, %s2487_s17  ;;  %v584_v34 = vsel %vm581_vm4, %v582_v27, %v583_v28  ;;  %v613_v35 = vsel %vm610_vm5, %v611_v29, %v612_v30  ;;  %v570_v36 = vrot.slane %v563_v33, 1  ;;  %v585_v37 = vrot.slane %v563_v33, 2  ;;  %v835_v32 = vld [vmem:[%s3403_s3 + $0x30] sm:$0xff] }
  0x2b   : > { %2151 = vmatpush3.bf16.msk.msra.mxu1 %vm2150_vm7, %v2149_v22  ;;  %v599_v40 = vrot.slane %v563_v33, 3  ;;  %v614_v41 = vrot.slane %v563_v33, 4  ;;  %vm827_vm7 = vcmask 523264  }
  0x2c   : > { %2152 = vmatprep.subr.bf16.mxu1 %v2482_v2  ;;  %v571_v38 = vsel %vm566_vm1, %v568_v24, %v570_v36  ;;  %v586_v39 = vsel %vm581_vm4, %v583_v28, %v585_v37 }
  0x2d   : > { %v600_v42 = vsel %vm562_vm3, %v597_v26, %v599_v40  ;;  %v615_v43 = vsel %vm610_vm5, %v612_v30, %v614_v41 }
  0x2e   : > { %587 = vrot.lane.b32.xlu0 %v584_v34, %s2488_s24  ;;  %616 = vrot.lane.b32.xlu1 %v613_v35, %s3426_s27 }
  0x32   : > { %574 = vrot.lane.b32.xlu0 %v571_v38, %s2486_s16  ;;  %589 = vrot.lane.b32.xlu1 %v586_v39, %s2488_s24 }
  0x36   : > { %603 = vrot.lane.b32.xlu0 %v600_v42, %s2487_s17  ;;  %618 = vrot.lane.b32.xlu1 %v615_v43, %s3426_s27 }
  0x3a   : > { %576 = vrot.lane.b32.xlu0 %v570_v36, %s2486_s16  ;;  %591 = vrot.lane.b32.xlu1 %v585_v37, %s2488_s24  ;;  %s2491_s24 = smov 32  }
  0x3e   : > { %605 = vrot.lane.b32.xlu0 %v599_v40, %s2487_s17  ;;  %620 = vrot.lane.b32.xlu1 %v614_v41, %s3426_s27  ;;  %s3428_s17 = smov 16  }
  0x9c   : > { %v573_v44 = vpop.permute.xlu0 %572  ;;  %v602_v45 = vpop.permute.xlu1 %601 }
  0x9d   : > { %v626_v46 = vsel %vm625_vm8, %v561_v20, %v573_v44  ;;  %v837_v44 = vld [vmem:[%s3403_s3 + $0x40] sm:$0xff] }
  0xa0   : > { %v588_v47 = vpop.permute.xlu0 %587  ;;  %v617_v48 = vpop.permute.xlu1 %616 }
  0xa1   : > { %v630_v49 = vsel %vm629_vm9, %v626_v46, %v588_v47 }
  0xa2   : > { %v634_v50 = vsel %vm633_vm10, %v630_v49, %v602_v45  ;;  %v838_v45 = vld [vmem:[%s3403_s3 + $0x48] sm:$0xff] }
  0xa3   : > { %v638_v51 = vsel %vm637_vm11, %v634_v50, %v617_v48  ;;  %v2165_v49 = vpack.c.bf16 %v838_v45, %v837_v44  ;;  %v1911_v45 = vld [vmem:[%s3404_s4] ss:$0 sm:$0xff] }
  0xa4   : > { %2037 = vmatmul.mubr.msk.f32.vlgmr.msra.gmra.mrb[0].mxu1 %vm656_vm12, %v638_v51  ;;  %v575_v52 = vpop.permute.xlu0 %574  ;;  %v590_v53 = vpop.permute.xlu1 %589 }
  0xa5   : > { %v627_v54 = vsel %vm625_vm8, %v2677_v19, %v575_v52  ;;  %2039 = vmatprep.mubr.msk.f32.mxu1 %vm2483_vm2, %v2484_v14  ;;  %2154 = vmatpush3.bf16.msra.mxu1 %v2153_v8 }
  0xa6   : > { %v631_v55 = vsel %vm629_vm9, %v627_v54, %v590_v53  ;;  %2155 = vmatprep.subr.bf16.mxu1 %v2482_v2 }
  0xa8   : > { %v604_v56 = vpop.permute.xlu0 %603  ;;  %v619_v57 = vpop.permute.xlu1 %618 }
  0xa9   : > { %v635_v58 = vsel %vm633_vm10, %v631_v55, %v604_v56  ;;  %2157 = vmatpush3.bf16.msra.mxu1 %v2156_v10 }
  0xaa   : > { %v639_v59 = vsel %vm637_vm11, %v635_v58, %v619_v57  ;;  %2158 = vmatprep.subr.bf16.mxu1 %v2482_v2 }
  0xab   : > { %2040 = vmatmul.mubr.msk.f32.gmra.mrb[2].mxu1 %vm656_vm12, %v639_v59 }
  0xac   : > { %v577_v60 = vpop.permute.xlu0 %576  ;;  %v592_v61 = vpop.permute.xlu1 %591  ;;  %2042 = vmatprep.mubr.msk.f32.mxu1 %vm2483_vm2, %v2484_v14 }
  0xad   : > { %v628_v62 = vsel %vm625_vm8, %v563_v33, %v577_v60  ;;  %2160 = vmatpush3.bf16.msra.mxu1 %v2159_v13  ;;  %v836_v33 = vld [vmem:[%s3403_s3 + $0x38] sm:$0xff]  ;;  %vm846_vm8 = vcmask 654336  }
  0xae   : > { %v632_v63 = vsel %vm629_vm9, %v628_v62, %v592_v61  ;;  %2161 = vmatprep.subr.bf16.mxu1 %v2482_v2  ;;  %v2162_v36 = vpack.c.bf16 %v836_v33, %v835_v32  ;;  %v957_v33 = vld [vmem:[%s3405_s5 + $0x60] sm:$0xff]  ;;  %vm943_vm9 = vcmask 785408  }
  0xb0   : > { %v606_v0 = vpop.permute.xlu0 %605  ;;  %v621_v1 = vpop.permute.xlu1 %620 }
  0xb1   : > { %v636_v3 = vsel %vm633_vm10, %v632_v63, %v606_v0  ;;  %2163 = vmatpush3.bf16.msra.mxu1 %v2162_v36  ;;  %v959_v36 = vld [vmem:[%s3405_s5 + $0x70] sm:$0xff]  ;;  %vm1737_vm10 = vcmask 629760  }
  0xb2   : > { %v640_v4 = vsel %vm637_vm11, %v636_v3, %v621_v1  ;;  %2164 = vmatprep.subr.bf16.mxu1 %v2482_v2 }
  0xb3   : > { %2043 = vmatmul.mubr.msk.f32.gmra.mrb[4].mxu1 %vm656_vm12, %v640_v4  ;;  %vm1755_vm12 = vcmask 809984  }
  0xb4   : > { %2065 = vmatprep.mubr.msk.f32.mxu1 %vm2483_vm2, %v2484_v14 }
  0xb5   : > { %2166 = vmatpush3.bf16.msra.mxu1 %v2165_v49 }
 0x177   : > { %v735_v16 = vpop.f32.mrb[0].mxu1 }
 0x178   : > { %v736_v17 = vadd.f32 %v1906_v15, %v735_v16  ;;  %v2038_v18 = vpop.f32.mrb[1].mxu1  ;;  %v946_v16 = vld [vmem:[%s3405_s5 + $0x8] sm:$0xff] }
 0x17a   : > { %v749_v19 = vmax.f32 %v736_v17, 0.0  ;;  %v947_v17 = vld [vmem:[%s3405_s5 + $0x10] sm:$0xff] }
 0x17c   : > { %v753_v20 = vrot.slane %v749_v19, 1 }
 0x17e   : > { %v755_v21 = vmax.f32 %v749_v19, %v753_v20  ;;  %v740_v22 = vpop.f32.mrb[2].mxu1  ;;  %v948_v19 = vld [vmem:[%s3405_s5 + $0x18] sm:$0xff] }
 0x17f   : > { %v741_v23 = vadd.f32 %v1906_v15, %v740_v22  ;;  %v2041_v24 = vpop.f32.mrb[3].mxu1  ;;  %v2171_v20 = vpack.c.bf16 %v948_v19, %v947_v17  ;;  %v950_v22 = vld [vmem:[%s3405_s5 + $0x28] sm:$0xff]  ;;  %v1072_v17 = vld [vmem:[%s3407_s7 + $0x50] sm:$0xff]  ;;  %v1077_v19 = vld [vmem:[%s3407_s7 + $0x78] sm:$0xff] }
 0x180   : > { %v765_v25 = vrot.slane %v755_v21, 1  ;;  %v767_v26 = vrot.slane %v755_v21, 2  ;;  %v769_v34 = vrot.slane %v755_v21, 3  ;;  %v951_v24 = vld [vmem:[%s3405_s5 + $0x30] sm:$0xff] }
 0x181   : > { %v750_v27 = vmax.f32 %v741_v23, 0.0 }
 0x182   : > { %v780_v28 = vsel %vm552_vm0, %v755_v21, %v765_v25  ;;  %v949_v21 = vld [vmem:[%s3405_s5 + $0x20] sm:$0xff]  ;;  %v952_v25 = vld [vmem:[%s3405_s5 + $0x38] sm:$0xff] }
 0x183   : > { %v757_v29 = vrot.slane %v750_v27, 1  ;;  %v782_v30 = vsel %vm781_vm13, %v780_v28, %v767_v26  ;;  %v2174_v23 = vpack.c.bf16 %v950_v22, %v949_v21  ;;  %v2177_v26 = vpack.c.bf16 %v952_v25, %v951_v24  ;;  %v954_v28 = vld [vmem:[%s3405_s5 + $0x48] sm:$0xff]  ;;  %v1074_v22 = vld [vmem:[%s3407_s7 + $0x60] sm:$0xff]  ;;  %v1081_v25 = vld [vmem:[%s3407_s7 + $0x98] sm:$0xff] }
 0x184   : > { %v784_v40 = vsel %vm783_vm14, %v782_v30, %v769_v34  ;;  %v955_v30 = vld [vmem:[%s3405_s5 + $0x50] sm:$0xff]  ;;  %v958_v34 = vld [vmem:[%s3405_s5 + $0x68] sm:$0xff] }
 0x185   : > { %v759_v31 = vmax.f32 %v750_v27, %v757_v29  ;;  %v953_v27 = vld [vmem:[%s3405_s5 + $0x40] sm:$0xff]  ;;  %v1079_v24 = vld [vmem:[%s3407_s7 + $0x88] sm:$0xff] }
 0x186   : > { %v745_v35 = vpop.f32.mrb[4].mxu1  ;;  %v2180_v29 = vpack.c.bf16 %v954_v28, %v953_v27  ;;  %v2213_v27 = vpack.c.bf16 %v1081_v25, %v1079_v24  ;;  %v1078_v28 = vld [vmem:[%s3407_s7 + $0x80] sm:$0xff]  ;;  %v1256_v25 = vld [vmem:[%s3409_s9 + $0x128] sm:$0xff] }
 0x187   : > { %v772_v37 = vrot.slane %v759_v31, 4  ;;  %v774_v38 = vrot.slane %v759_v31, 5  ;;  %v2044_v39 = vpop.f32.mrb[5].mxu1  ;;  %v746_v41 = vadd.f32 %v1906_v15, %v745_v35  ;;  %v776_v42 = vrot.slane %v759_v31, 6  ;;  %v945_v15 = vld [vmem:[%s3405_s5] sm:$0xff] }
 0x188   : > { %v778_v46 = vrot.slane %v759_v31, 7  ;;  %v2168_v18 = vpack.c.bf16 %v946_v16, %v945_v15  ;;  %v956_v31 = vld [vmem:[%s3405_s5 + $0x58] sm:$0xff]  ;;  %v2186_v35 = vpack.c.bf16 %v958_v34, %v957_v33  ;;  %v961_v39 = vld [vmem:[%s3405_s5 + $0x80] sm:$0xff] }
 0x189   : > { %v785_v43 = vsel %vm610_vm5, %v784_v40, %v772_v37  ;;  %v751_v48 = vmax.f32 %v746_v41, 0.0  ;;  %v2183_v32 = vpack.c.bf16 %v956_v31, %v955_v30  ;;  %v960_v37 = vld [vmem:[%s3405_s5 + $0x78] sm:$0xff]  ;;  %v962_v40 = vld [vmem:[%s3405_s5 + $0x88] sm:$0xff]  ;;  %v1070_v16 = vld [vmem:[%s3407_s7 + $0x40] sm:$0xff] }
 0x18a   : > { %v786_v47 = vsel %vm562_vm3, %v785_v43, %v774_v38  ;;  %2169 = vmatpush1.bf16.msra.mxu0 %v2168_v18  ;;  %v2189_v38 = vpack.c.bf16 %v960_v37, %v959_v36  ;;  %v2192_v41 = vpack.c.bf16 %v962_v40, %v961_v39  ;;  %v964_v43 = vld [vmem:[%s3405_s5 + $0x98] sm:$0xff]  ;;  %v1075_v18 = vld [vmem:[%s3407_s7 + $0x68] sm:$0xff]  ;;  %v1082_v34 = vld [vmem:[%s3407_s7 + $0xa0] sm:$0xff] }
 0x18b   : > { %v787_v50 = vsel %vm581_vm4, %v786_v47, %v776_v42  ;;  %v761_v51 = vrot.slane %v751_v48, 1  ;;  %2170 = vmatprep.subr.bf16.mxu0 %v2482_v2  ;;  %v963_v42 = vld [vmem:[%s3405_s5 + $0x90] sm:$0xff]  ;;  %v2209_v21 = vpack.c.bf16 %v1077_v19, %v1075_v18  ;;  %v1083_v30 = vld [vmem:[%s3407_s7 + $0xa8] sm:$0xff]  ;;  %v1085_v31 = vld [vmem:[%s3407_s7 + $0xb8] sm:$0xff] }
 0x18c   : > { %v788_v52 = vsel %vm566_vm1, %v787_v50, %v778_v46  ;;  %v2195_v44 = vpack.c.bf16 %v964_v43, %v963_v42  ;;  %v2854_v50 = vrot.slane %v2484_v14, 4  ;;  %v2217_v33 = vpack.c.bf16 %v1085_v31, %v1083_v30  ;;  %v1087_v36 = vld [vmem:[%s3407_s7 + $0xc8] sm:$0xff]  ;;  %v1089_v37 = vld [vmem:[%s3407_s7 + $0xd8] sm:$0xff]  ;;  %v1086_v40 = vld [vmem:[%s3407_s7 + $0xc0] sm:$0xff] }
 0x18d   : > { %v791_v53 = vrot.slane %v788_v52, 7  ;;  %v763_v54 = vmax.f32 %v751_v48, %v761_v51  ;;  %v2221_v39 = vpack.c.bf16 %v1089_v37, %v1087_v36  ;;  %v1091_v42 = vld [vmem:[%s3407_s7 + $0xe8] sm:$0xff]  ;;  %v1093_v43 = vld [vmem:[%s3407_s7 + $0xf8] sm:$0xff]  ;;  %v1255_v24 = vld [vmem:[%s3409_s9 + $0x120] sm:$0xff] }
 0x18e   : > { %2172 = vmatpush1.bf16.msra.mxu0 %v2171_v20  ;;  %v2207_v20 = vpack.c.bf16 %v1072_v17, %v1070_v16  ;;  %v1252_v16 = vld [vmem:[%s3409_s9 + $0x108] sm:$0xff]  ;;  %v1253_v17 = vld [vmem:[%s3409_s9 + $0x110] sm:$0xff]  ;;  %v1254_v19 = vld [vmem:[%s3409_s9 + $0x118] sm:$0xff] }
 0x18f   : > { %v796_v55 = vsel %vm552_vm0, 0.0, %v791_v53  ;;  %v792_v56 = vrot.slane %v763_v54, 7  ;;  %2173 = vmatprep.subr.bf16.mxu0 %v2482_v2  ;;  %v1258_v30 = vld [vmem:[%s3409_s9 + $0x138] sm:$0xff]  ;;  %v1235_v36 = vld [vmem:[%s3409_s9 + $0x80] sm:$0xff]  ;;  %v1236_v37 = vld [vmem:[%s3409_s9 + $0x88] sm:$0xff] }
 0x190   : > { %v799_v57 = vrot.slane %v796_v55, 1  ;;  %v810_v60 = vrot.slane %v796_v55, 3  ;;  %v804_v62 = vrot.slane %v796_v55, 2  ;;  %v816_v4 = vrot.slane %v796_v55, 4 }
 0x191   : > { %v793_v58 = vsel %vm552_vm0, %v791_v53, %v792_v56 }
 0x192   : > { %800 = vrot.lane.b32.xlu0 %v799_v57, %s3428_s17  ;;  %v797_v59 = vsel %vm781_vm13, %v793_v58, 0.0  ;;  %2175 = vmatpush1.bf16.msra.mxu0 %v2174_v23  ;;  %v1076_v23 = vld [vmem:[%s3407_s7 + $0x70] sm:$0xff]  ;;  %s2501_s17 = smov 77  }
 0x193   : > { %v811_v61 = vrot.slane %v797_v59, 3  ;;  %v805_v63 = vrot.slane %v797_v59, 2  ;;  %v817_v3 = vrot.slane %v797_v59, 4  ;;  %2176 = vmatprep.subr.bf16.mxu0 %v2482_v2 }
 0x195   : > { %v812_v0 = vsel %vm562_vm3, %v810_v60, %v811_v61  ;;  %v806_v1 = vsel %vm581_vm4, %v804_v62, %v805_v63  ;;  %v818_v5 = vsel %vm610_vm5, %v816_v4, %v817_v3  ;;  %v1063_v63 = vld [vmem:[%s3407_s7 + $0x8] sm:$0xff]  ;;  %v1064_v4 = vld [vmem:[%s3407_s7 + $0x10] sm:$0xff] }
 0x196   : > { %813 = vrot.lane.b32.xlu0 %v812_v0, %s3426_s27  ;;  %807 = vrot.lane.b32.xlu1 %v806_v1, %s2491_s24  ;;  %v1065_v0 = vld [vmem:[%s3407_s7 + $0x18] sm:$0xff]  ;;  %v1062_v1 = vld [vmem:[%s3407_s7] sm:$0xff]  ;;  %s2500_s27 = smov 88  }
 0x197   : > { %2178 = vmatpush1.bf16.msra.mxu0 %v2177_v26  ;;  %v2197_v3 = vpack.c.bf16 %v1065_v0, %v1063_v63  ;;  %v2211_v26 = vpack.c.bf16 %v1076_v23, %v1074_v22 }
 0x198   : > { %2179 = vmatprep.subr.bf16.mxu0 %v2482_v2 }
 0x199   : > { %2198 = vmatprep.subr.bf16.mxu1 %v2197_v3 }
 0x19a   : > { %819 = vrot.lane.b32.xlu1 %v818_v5, %s2492_s21  ;;  %v1067_v5 = vld [vmem:[%s3407_s7 + $0x28] sm:$0xff] }
 0x19b   : > { %2181 = vmatpush1.bf16.msra.mxu0 %v2180_v29  ;;  %v1080_v29 = vld [vmem:[%s3407_s7 + $0x90] sm:$0xff] }
 0x19c   : > { %2182 = vmatprep.subr.bf16.mxu0 %v2482_v2 }
 0x19f   : > { %2184 = vmatpush1.bf16.msra.mxu0 %v2183_v32  ;;  %v2215_v32 = vpack.c.bf16 %v1080_v29, %v1078_v28  ;;  %v1257_v29 = vld [vmem:[%s3409_s9 + $0x130] sm:$0xff] }
 0x1a0   : > { %2185 = vmatprep.subr.bf16.mxu0 %v2482_v2  ;;  %v2279_v31 = vpack.c.bf16 %v1258_v30, %v1257_v29 }
 0x1a3   : > { %2187 = vmatpush1.bf16.msra.mxu0 %v2186_v35  ;;  %v1084_v35 = vld [vmem:[%s3407_s7 + $0xb0] sm:$0xff] }
 0x1a4   : > { %2188 = vmatprep.subr.bf16.mxu0 %v2482_v2 }
 0x1a7   : > { %2190 = vmatpush1.bf16.msra.mxu0 %v2189_v38  ;;  %v2219_v38 = vpack.c.bf16 %v1084_v35, %v1082_v34 }
 0x1a8   : > { %2191 = vmatprep.subr.bf16.mxu0 %v2482_v2 }
 0x1ab   : > { %2193 = vmatpush1.bf16.msra.mxu0 %v2192_v41  ;;  %v1088_v41 = vld [vmem:[%s3407_s7 + $0xd0] sm:$0xff] }
 0x1ac   : > { %2194 = vmatprep.subr.bf16.mxu0 %v2482_v2 }
 0x1af   : > { %2196 = vmatpush1.bf16.msra.mxu0 %v2195_v44  ;;  %v2223_v44 = vpack.c.bf16 %v1088_v41, %v1086_v40  ;;  %v2237_v40 = vpack.c.bf16 %v1236_v37, %v1235_v36  ;;  %v1220_v41 = vld [vmem:[%s3409_s9 + $0x8] sm:$0xff] }
 0x1b1   : > { %2238 = vmatprep.subr.bf16.mxu0 %v2237_v40 }
 0x204   : > { %v801_v6 = vpop.permute.xlu0 %800 }
 0x205   : > { %v823_v7 = vsel %vm822_vm15, %v796_v55, %v801_v6  ;;  %v1069_v6 = vld [vmem:[%s3407_s7 + $0x38] sm:$0xff] }
 0x208   : > { %v808_v8 = vpop.permute.xlu1 %807  ;;  %v814_v10 = vpop.permute.xlu0 %813 }
 0x209   : > { %v825_v9 = vsel %vm824_vm6, %v823_v7, %v808_v8  ;;  %v2199_v7 = vpack.c.bf16 %v1064_v4, %v1062_v1  ;;  %v2201_v8 = vpack.c.bf16 %v1069_v6, %v1067_v5 }
 0x20a   : > { %v826_v11 = vsel %vm637_vm11, %v825_v9, %v814_v10  ;;  %v1066_v9 = vld [vmem:[%s3407_s7 + $0x20] sm:$0xff]  ;;  %v1068_v10 = vld [vmem:[%s3407_s7 + $0x30] sm:$0xff] }
 0x20c   : > { %v820_v12 = vpop.permute.xlu1 %819 }
 0x20d   : > { %v828_v13 = vsel %vm827_vm7, %v826_v11, %v820_v12  ;;  %v1071_v11 = vld [vmem:[%s3407_s7 + $0x48] sm:$0xff]  ;;  %v1073_v12 = vld [vmem:[%s3407_s7 + $0x58] sm:$0xff] }
 0x20e   : > { %2066 = vmatmul.mubr.msk.f32.vlgmr.msra.gmra.mrb[6].mxu1 %vm846_vm8, %v828_v13  ;;  %v2203_v13 = vpack.c.bf16 %v1068_v10, %v1066_v9  ;;  %v2205_v15 = vpack.c.bf16 %v1073_v12, %v1071_v11 }
 0x20f   : > { %2200 = vmatpush1.bf16.msra.mxu1 %v2199_v7 }
 0x210   : > { %2202 = vmatprep.subr.bf16.mxu1 %v2201_v8 }
 0x213   : > { %2204 = vmatpush1.bf16.msra.mxu1 %v2203_v13 }
 0x214   : > { %2206 = vmatprep.subr.bf16.mxu1 %v2205_v15  ;;  %v1251_v15 = vld [vmem:[%s3409_s9 + $0x100] sm:$0xff] }
 0x215   : > { %v2270_v18 = vpack.c.bf16 %v1252_v16, %v1251_v15  ;;  %v1231_v15 = vld [vmem:[%s3409_s9 + $0x60] sm:$0xff]  ;;  %v1232_v16 = vld [vmem:[%s3409_s9 + $0x68] sm:$0xff] }
 0x217   : > { %2208 = vmatpush1.bf16.msra.mxu1 %v2207_v20  ;;  %v2273_v20 = vpack.c.bf16 %v1254_v19, %v1253_v17  ;;  %v2263_v17 = vpack.c.bf16 %v1232_v16, %v1231_v15  ;;  %v1916_v15 = vld [vmem:[%s3410_s10] ss:$0 sm:$0xff] }
 0x218   : > { %2210 = vmatprep.subr.bf16.mxu1 %v2209_v21  ;;  %v1104_v21 = vlaneseq }
 0x21a   : > { %v3013_v22 = vshrl.u32 %v1104_v21, 7  ;;  %v1249_v21 = vld [vmem:[%s3409_s9 + $0xf0] sm:$0xff] }
 0x21b   : > { %2212 = vmatpush1.bf16.msra.mxu1 %v2211_v26  ;;  %v3025_v26 = vld [vmem:[%s3408_s8] sm:$0x3] }
 0x21c   : > { %2214 = vmatprep.subr.bf16.mxu1 %v2213_v27  ;;  %v1106_v23 = vsub.s32 0, %v3013_v22  ;;  %v2276_v27 = vpack.c.bf16 %v1256_v25, %v1255_v24 }
 0x21e   : > { %v1107_v28 = vrot.slane %v3025_v26, %v1106_v23  ;;  %v1250_v23 = vld [vmem:[%s3409_s9 + $0xf8] sm:$0xff] }
 0x21f   : > { %2216 = vmatpush1.bf16.msra.mxu1 %v2215_v32  ;;  %v2265_v25 = vpack.c.bf16 %v1250_v23, %v1249_v21 }
 0x220   : > { %2218 = vmatprep.subr.bf16.mxu1 %v2217_v33 }
 0x223   : > { %2220 = vmatpush1.bf16.msra.mxu1 %v2219_v38  ;;  %v1219_v38 = vld [vmem:[%s3409_s9] sm:$0xff] }
 0x224   : > { %2222 = vmatprep.subr.bf16.mxu1 %v2221_v39 }
 0x227   : > { %2224 = vmatpush1.bf16.msra.mxu1 %v2223_v44  ;;  %v2239_v44 = vpack.c.bf16 %v1220_v41, %v1219_v38 }
 0x2e1   : > { %v916_v46 = vpop.f32.mrb[6].mxu1 }
 0x2e2   : > { %v917_v47 = vadd.f32 %v1911_v45, %v916_v46  ;;  %v2067_v48 = vpop.f32.mrb[7].mxu1  ;;  %v2225_v45 = vpack.c.bf16 %v1093_v43, %v1091_v42  ;;  %v1090_v46 = vld [vmem:[%s3407_s7 + $0xe0] sm:$0xff]  ;;  %v1237_v42 = vld [vmem:[%s3409_s9 + $0x90] sm:$0xff]  ;;  %v1238_v43 = vld [vmem:[%s3409_s9 + $0x98] sm:$0xff] }
 0x2e3   : > { %v1095_v48 = vld [vmem:[%s3407_s7 + $0x108] sm:$0xff] }
 0x2e4   : > { %v921_v49 = vrot.slane %v917_v47, 7  ;;  %v1092_v47 = vld [vmem:[%s3407_s7 + $0xf0] sm:$0xff]  ;;  %2226 = vmatprep.subr.bf16.mxu1 %v2225_v45  ;;  %v2241_v45 = vpack.c.bf16 %v1238_v43, %v1237_v42 }
 0x2e6   : > { %v923_v51 = vsel %vm552_vm0, 0.0, %v921_v49  ;;  %v1097_v49 = vld [vmem:[%s3407_s7 + $0x118] sm:$0xff] }
 0x2e7   : > { %v929_v52 = vrot.slane %v923_v51, 2  ;;  %v925_v53 = vrot.slane %v923_v51, 1  ;;  %v938_v54 = vrot.slane %v923_v51, 4  ;;  %v933_v56 = vrot.slane %v923_v51, 3 }
 0x2e9   : > { %930 = vrot.lane.b32.xlu1 %v929_v52, %s2492_s21  ;;  %926 = vrot.lane.b32.xlu0 %v925_v53, %s2491_s24  ;;  %v940_v55 = vsel %vm610_vm5, %v938_v54, %v2854_v50  ;;  %v2229_v52 = vpack.c.bf16 %v1097_v49, %v1095_v48  ;;  %v1094_v53 = vld [vmem:[%s3407_s7 + $0x100] sm:$0xff]  ;;  %v1096_v54 = vld [vmem:[%s3407_s7 + $0x110] sm:$0xff] }
 0x2ea   : > { %1914 = vmatprep.mubr.msk.f32.mxu0 %vm824_vm6, %v940_v55  ;;  %v2231_v55 = vpack.c.bf16 %v1096_v54, %v1094_v53  ;;  %v1239_v48 = vld [vmem:[%s3409_s9 + $0xa0] sm:$0xff]  ;;  %v1240_v49 = vld [vmem:[%s3409_s9 + $0xa8] sm:$0xff] }
 0x2eb   : > { %v1223_v53 = vld [vmem:[%s3409_s9 + $0x20] sm:$0xff]  ;;  %v1224_v54 = vld [vmem:[%s3409_s9 + $0x28] sm:$0xff] }
 0x2ed   : > { %934 = vrot.lane.b32.xlu0 %v933_v56, %s3430_s20  ;;  %v1099_v56 = vld [vmem:[%s3407_s7 + $0x128] sm:$0xff]  ;;  %s539_s20 = sand.u32 1, %s2472_s25  }
 0x2ee   : > { %s540_s16 = scalar_lea.vmem [#allocation2], %s539_s20 }
 0x2ef   : > { %s1846_s22 = sshll.u32 %s540_s16, 4  ;;  %s3360_s22 = int_to_ptr.vmem [resolvable:$true] %s1846_s22 }
 0x35b   : > { %v927_v57 = vpop.permute.xlu0 %926  ;;  %v931_v58 = vpop.permute.xlu1 %930 }
 0x35c   : > { %v941_v59 = vsel %vm824_vm6, %v923_v51, %v927_v57  ;;  %v2227_v51 = vpack.c.bf16 %v1092_v47, %v1090_v46  ;;  %v1101_v57 = vld [vmem:[%s3407_s7 + $0x138] sm:$0xff]  ;;  %v1221_v46 = vld [vmem:[%s3409_s9 + $0x10] sm:$0xff] }
 0x35d   : > { %v942_v61 = vsel %vm827_vm7, %v941_v59, %v931_v58  ;;  %v2233_v58 = vpack.c.bf16 %v1101_v57, %v1099_v56  ;;  %v1098_v59 = vld [vmem:[%s3407_s7 + $0x120] sm:$0xff]  ;;  %v1222_v47 = vld [vmem:[%s3409_s9 + $0x18] sm:$0xff]  ;;  %v2247_v57 = vpack.c.bf16 %v1224_v54, %v1223_v53 }
 0x35e   : > { %2228 = vmatpush1.bf16.msra.mxu1 %v2227_v51  ;;  %v2243_v51 = vpack.c.bf16 %v1222_v47, %v1221_v46  ;;  %v1242_v56 = vld [vmem:[%s3409_s9 + $0xb8] sm:$0xff] }
 0x35f   : > { %v935_v60 = vpop.permute.xlu0 %934  ;;  %2230 = vmatprep.subr.bf16.mxu1 %v2229_v52  ;;  %v2245_v52 = vpack.c.bf16 %v1240_v49, %v1239_v48  ;;  %v1435_v48 = vld [vmem:[%s3411_s11] sm:$0xff]  ;;  %v1436_v49 = vld [vmem:[%s3411_s11 + $0x8] sm:$0xff]  ;;  %v1438_v53 = vld [vmem:[%s3411_s11 + $0x18] sm:$0xff] }
 0x360   : > { %v944_v62 = vsel %vm943_vm9, %v942_v61, %v935_v60  ;;  %v1100_v60 = vld [vmem:[%s3407_s7 + $0x130] sm:$0xff] }
 0x361   : > { %1039 = vmatmul.mubr.f32.vlgmr.msra.gmra.mrb[0].mxu0 %v944_v62  ;;  %v2235_v61 = vpack.c.bf16 %v1100_v60, %v1098_v59  ;;  %v1913_v62 = vld [vmem:[%s3406_s6] ss:$0 sm:$0xff]  ;;  %v1225_v59 = vld [vmem:[%s3409_s9 + $0x30] sm:$0xff]  ;;  %v1226_v60 = vld [vmem:[%s3409_s9 + $0x38] sm:$0xff] }
 0x362   : > { %2232 = vmatpush1.bf16.msra.mxu1 %v2231_v55  ;;  %2240 = vmatpush3.bf16.msra.mxu0 %v2239_v44  ;;  %v1241_v55 = vld [vmem:[%s3409_s9 + $0xb0] sm:$0xff] }
 0x363   : > { %2234 = vmatprep.subr.bf16.mxu1 %v2233_v58  ;;  %2242 = vmatprep.subr.bf16.mxu0 %v2241_v45  ;;  %v2249_v58 = vpack.c.bf16 %v1242_v56, %v1241_v55  ;;  %v1439_v55 = vld [vmem:[%s3411_s11 + $0x20] sm:$0xff]  ;;  %v1440_v56 = vld [vmem:[%s3411_s11 + $0x28] sm:$0xff] }
 0x366   : > { %2236 = vmatpush1.bf16.msra.mxu1 %v2235_v61  ;;  %2244 = vmatpush3.bf16.msra.mxu0 %v2243_v51  ;;  %v1243_v61 = vld [vmem:[%s3409_s9 + $0xc0] sm:$0xff]  ;;  %v1437_v51 = vld [vmem:[%s3411_s11 + $0x10] sm:$0xff] }
 0x367   : > { %2269 = vmatprep.subr.bf16.mxu1 %v2482_v2  ;;  %2246 = vmatprep.subr.bf16.mxu0 %v2245_v52  ;;  %v2282_v52 = vpack.c.bf16 %v1436_v49, %v1435_v48  ;;  %v2285_v54 = vpack.c.bf16 %v1438_v53, %v1437_v51  ;;  %v1591_v48 = vld [vmem:[%s3413_s13 + $0x28] sm:$0xff] }
 0x36a   : > { %2248 = vmatpush3.bf16.msra.mxu0 %v2247_v57  ;;  %v2288_v57 = vpack.c.bf16 %v1440_v56, %v1439_v55  ;;  %v1593_v55 = vld [vmem:[%s3413_s13 + $0x38] sm:$0xff] }
 0x36b   : > { %2250 = vmatprep.subr.bf16.mxu0 %v2249_v58  ;;  %v1441_v58 = vld [vmem:[%s3411_s11 + $0x30] sm:$0xff] }
 0x434   : > { %v1040_v63 = vpop.f32.mrb[0].mxu0 }
 0x435   : > { %v1041_v0 = vadd.f32 %v1913_v62, %v1040_v63  ;;  %v1042_v1 = vpop.f32.mrb[1].mxu0  ;;  %v1244_v62 = vld [vmem:[%s3409_s9 + $0xc8] sm:$0xff]  ;;  %v2251_v63 = vpack.c.bf16 %v1226_v60, %v1225_v59  ;;  %v1442_v59 = vld [vmem:[%s3411_s11 + $0x38] sm:$0xff] }
 0x436   : > { %v1227_v1 = vld [vmem:[%s3409_s9 + $0x40] sm:$0xff]  ;;  %v2291_v60 = vpack.c.bf16 %v1442_v59, %v1441_v58 }
 0x437   : > { %v1044_v3 = vmax.f32 %v1041_v0, 0.0  ;;  %v2253_v0 = vpack.c.bf16 %v1244_v62, %v1243_v61  ;;  %2252 = vmatpush3.bf16.msra.mxu0 %v2251_v63  ;;  %v1443_v61 = vld [vmem:[%s3411_s11 + $0x40] sm:$0xff]  ;;  %v1444_v62 = vld [vmem:[%s3411_s11 + $0x48] sm:$0xff] }
 0x438   : > { %v2294_v63 = vpack.c.bf16 %v1444_v62, %v1443_v61  ;;  %v1594_v59 = vld [vmem:[%s3413_s13 + $0x40] sm:$0xff] }
 0x439   : > { %v1058_v4 = vrot.slane %v1044_v3, 4  ;;  %v1050_v5 = vrot.slane %v1044_v3, 2  ;;  %v1046_v6 = vrot.slane %v1044_v3, 1  ;;  %v1054_v7 = vrot.slane %v1044_v3, 3  ;;  %2254 = vmatprep.subr.bf16.mxu0 %v2253_v0  ;;  %v1445_v0 = vld [vmem:[%s3411_s11 + $0x50] sm:$0xff] }
 0x43b   : > { %1915 = vmatprep.mubr.msk.f32.mxu1 %vm824_vm6, %v1058_v4  ;;  %1051 = vrot.lane.b32.xlu0 %v1050_v5, %s2492_s21  ;;  %v1245_v4 = vld [vmem:[%s3409_s9 + $0xd0] sm:$0xff]  ;;  %v1246_v5 = vld [vmem:[%s3409_s9 + $0xd8] sm:$0xff] }
 0x43c   : > { %1047 = vrot.lane.b32.xlu1 %v1046_v6, %s2491_s24 }
 0x440   : > { %1055 = vrot.lane.b32.xlu1 %v1054_v7, %s3446_s26  ;;  %v2257_v7 = vpack.c.bf16 %v1246_v5, %v1245_v4  ;;  %v1447_v4 = vld [vmem:[%s3411_s11 + $0x60] sm:$0xff]  ;;  %v1448_v5 = vld [vmem:[%s3411_s11 + $0x68] sm:$0xff] }
 0x4ad   : > { %v1052_v9 = vpop.permute.xlu0 %1051 }
 0x4ae   : > { %v1048_v8 = vpop.permute.xlu1 %1047 }
 0x4af   : > { %v1059_v10 = vsel %vm824_vm6, %v1044_v3, %v1048_v8  ;;  %v1228_v3 = vld [vmem:[%s3409_s9 + $0x48] sm:$0xff]  ;;  %v1229_v8 = vld [vmem:[%s3409_s9 + $0x50] sm:$0xff] }
 0x4b0   : > { %v1060_v11 = vsel %vm827_vm7, %v1059_v10, %v1052_v9  ;;  %v2255_v6 = vpack.c.bf16 %v1228_v3, %v1227_v1  ;;  %v1230_v9 = vld [vmem:[%s3409_s9 + $0x58] sm:$0xff]  ;;  %v1247_v10 = vld [vmem:[%s3409_s9 + $0xe0] sm:$0xff] }
 0x4b1   : > { %v1446_v1 = vld [vmem:[%s3411_s11 + $0x58] sm:$0xff] }
 0x4b2   : > { %v1056_v12 = vpop.permute.xlu1 %1055  ;;  %2256 = vmatpush3.bf16.msra.mxu0 %v2255_v6  ;;  %v2297_v3 = vpack.c.bf16 %v1446_v1, %v1445_v0  ;;  %v2300_v6 = vpack.c.bf16 %v1448_v5, %v1447_v4 }
 0x4b3   : > { %v1061_v13 = vsel %vm943_vm9, %v1060_v11, %v1056_v12  ;;  %v1248_v11 = vld [vmem:[%s3409_s9 + $0xe8] sm:$0xff]  ;;  %v2259_v12 = vpack.c.bf16 %v1230_v9, %v1229_v8  ;;  %2258 = vmatprep.subr.bf16.mxu0 %v2257_v7  ;;  %v1449_v7 = vld [vmem:[%s3411_s11 + $0x70] sm:$0xff]  ;;  %v1450_v8 = vld [vmem:[%s3411_s11 + $0x78] sm:$0xff] }
 0x4b4   : > { %1181 = vmatmul.mubr.f32.vlgmr.msra.gmra.mrb[8].mxu1 %v1061_v13  ;;  %v2261_v13 = vpack.c.bf16 %v1248_v11, %v1247_v10  ;;  %v2303_v9 = vpack.c.bf16 %v1450_v8, %v1449_v7  ;;  %v1451_v10 = vld [vmem:[%s3411_s11 + $0x80] sm:$0xff]  ;;  %v1452_v11 = vld [vmem:[%s3411_s11 + $0x88] sm:$0xff] }
 0x4b5   : > { %2084 = vmatprep.mubr.msk.f32.mxu1 %vm2483_vm2, %v2484_v14  ;;  %2271 = vmatpush3.bf16.msra.mxu1 %v2270_v18  ;;  %v1110_v18 = vsub.s32 1, %v3013_v22  ;;  %v1234_v22 = vld [vmem:[%s3409_s9 + $0x78] sm:$0xff] }
 0x4b6   : > { %2272 = vmatprep.subr.bf16.mxu1 %v2482_v2  ;;  %2260 = vmatpush3.bf16.msra.mxu0 %v2259_v12  ;;  %v2306_v12 = vpack.c.bf16 %v1452_v11, %v1451_v10 }
 0x4b7   : > { %2262 = vmatprep.subr.bf16.mxu0 %v2261_v13  ;;  %v1111_v19 = vrot.slane %v3025_v26, %v1110_v18  ;;  %v1454_v18 = vld [vmem:[%s3411_s11 + $0x98] sm:$0xff] }
 0x4b9   : > { %2274 = vmatpush3.bf16.msra.mxu1 %v2273_v20 }
 0x4ba   : > { %2275 = vmatprep.subr.bf16.mxu1 %v2482_v2  ;;  %2264 = vmatpush3.bf16.msra.mxu0 %v2263_v17  ;;  %v1453_v17 = vld [vmem:[%s3411_s11 + $0x90] sm:$0xff] }
 0x4bb   : > { %2266 = vmatprep.subr.bf16.mxu0 %v2265_v25 }
 0x4bd   : > { %2277 = vmatpush3.bf16.msra.mxu1 %v2276_v27  ;;  %v1233_v27 = vld [vmem:[%s3409_s9 + $0x70] sm:$0xff] }
 0x4be   : > { %2278 = vmatprep.subr.bf16.mxu1 %v2482_v2  ;;  %v2267_v26 = vpack.c.bf16 %v1234_v22, %v1233_v27  ;;  %v1419_v27 = vrot.slane %v2484_v14, 2 }
 0x4c0   : > { %2268 = vmatpush3.bf16.msra.mxu0 %v2267_v26 }
 0x4c1   : > { %2280 = vmatpush3.bf16.msra.mxu1 %v2279_v31 }
 0x4c2   : > { %2281 = vmatprep.subr.bf16.mxu1 %v2482_v2 }
 0x587   : > { %v1182_v32 = vpop.f32.mrb[8].mxu1 }
 0x588   : > { %v3035_v33 = vadd.f32 %v1182_v32, %v1107_v28  ;;  %v3037_v34 = vpop.f32.mrb[9].mxu1 }
 0x589   : > { %v1185_v20 = vadd.f32 %v3037_v34, %v1111_v19 }
 0x58a   : > { %v1187_v35 = vmax.f32 %v3035_v33, 0.0 }
 0x58b   : > { %v1188_v24 = vmax.f32 %v1185_v20, 0.0  ;;  %v2309_v20 = vpack.c.bf16 %v1454_v18, %v1453_v17 }
 0x58c   : > { %v1190_v39 = vrot.slane %v1187_v35, 7 }
 0x58d   : > { %v1195_v28 = vrot.slane %v1188_v24, 6 }
 0x58e   : > { %1191 = vrot.lane.b32.xlu0 %v1190_v39, %s2492_s21 }
 0x600   : > { %v1192_v29 = vpop.permute.xlu0 %1191 }
 0x601   : > { %v1197_v30 = vsel %vm552_vm0, %v1187_v35, %v1192_v29  ;;  %vm1725_vm0 = vcmask 89088  }
 0x602   : > { %v1198_v31 = vsel %vm781_vm13, %v1197_v30, %v1195_v28 }
 0x603   : > { %v1200_v32 = vrot.slane %v1198_v31, 5  ;;  %v1425_v31 = vrot.slane %v2484_v14, 3 }
 0x605   : > { %v1202_v34 = vsel %vm783_vm14, 0.0, %v1200_v32 }
 0x606   : > { %v1203_v36 = vsel %vm581_vm4, %v1202_v34, 0.0 }
 0x607   : > { %v1215_v37 = vrot.slane %v1203_v36, 4  ;;  %v1205_v38 = vrot.slane %v1203_v36, 1  ;;  %v1211_v39 = vrot.slane %v1203_v36, 3  ;;  %v1209_v43 = vrot.slane %v1203_v36, 2 }
 0x609   : > { %v1216_v40 = vsel %vm610_vm5, %v1215_v37, %v2854_v50  ;;  %v2409_v41 = vpack.i.bf16 %v1205_v38, %v1211_v39 }
 0x60a   : > { %2085 = vmatmul.mubr.msk.f32.vlgmr.msra.gmra.mrb[10].mxu1 %vm827_vm7, %v1216_v40 }
 0x60b   : > { %2410 = vrot.lane.b32.xlu1 %v2409_v41, %s2492_s21  ;;  %2283 = vmatpush1.bf16.msra.mxu1 %v2282_v52 }
 0x60c   : > { %2284 = vmatprep.subr.bf16.mxu1 %v2482_v2 }
 0x60f   : > { %2286 = vmatpush1.bf16.msra.mxu1 %v2285_v54  ;;  %v1592_v54 = vld [vmem:[%s3413_s13 + $0x30] sm:$0xff] }
 0x610   : > { %2287 = vmatprep.subr.bf16.mxu1 %v2482_v2 }
 0x613   : > { %2289 = vmatpush1.bf16.msra.mxu1 %v2288_v57  ;;  %v2323_v57 = vpack.c.bf16 %v1593_v55, %v1592_v54  ;;  %v1751_v54 = vld [vmem:[%s3415_s15 + $0x50] sm:$0xff]  ;;  %v1752_v55 = vld [vmem:[%s3415_s15 + $0x58] sm:$0xff] }
 0x614   : > { %2290 = vmatprep.subr.bf16.mxu1 %v2482_v2 }
 0x617   : > { %2292 = vmatpush1.bf16.msra.mxu1 %v2291_v60  ;;  %v1595_v60 = vld [vmem:[%s3413_s13 + $0x48] sm:$0xff] }
 0x618   : > { %2293 = vmatprep.subr.bf16.mxu1 %v2482_v2 }
 0x61b   : > { %2295 = vmatpush1.bf16.msra.mxu1 %v2294_v63  ;;  %v2327_v63 = vpack.c.bf16 %v1595_v60, %v1594_v59 }
 0x61c   : > { %2296 = vmatprep.subr.bf16.mxu1 %v2482_v2 }
 0x61f   : > { %2298 = vmatpush1.bf16.msra.mxu1 %v2297_v3 }
 0x620   : > { %2299 = vmatprep.subr.bf16.mxu1 %v2482_v2 }
 0x623   : > { %2301 = vmatpush1.bf16.msra.mxu1 %v2300_v6 }
 0x624   : > { %2302 = vmatprep.subr.bf16.mxu1 %v2482_v2 }
 0x627   : > { %2304 = vmatpush1.bf16.msra.mxu1 %v2303_v9 }
 0x628   : > { %2305 = vmatprep.subr.bf16.mxu1 %v2482_v2 }
 0x62b   : > { %2307 = vmatpush1.bf16.msra.mxu1 %v2306_v12 }
 0x62c   : > { %2308 = vmatprep.subr.bf16.mxu1 %v2482_v2 }
 0x62f   : > { %2310 = vmatpush1.bf16.msra.mxu1 %v2309_v20 }
 0x67d   : > { %v2411_v33 = vpop.permute.xlu1 %2410 }
 0x67e   : > { %v2413_v35 = vunpack.i.h.bf16 %v2411_v33  ;;  %v2412_v42 = vunpack.i.l.bf16 %v2411_v33 }
 0x680   : > { %v1218_v44 = vsel %vm827_vm7, %v1209_v43, %v2412_v42  ;;  %v1217_v45 = vsel %vm827_vm7, %v1203_v36, %v2413_v35  ;;  %v1587_v35 = vld [vmem:[%s3413_s13 + $0x8] sm:$0xff]  ;;  %v1588_v42 = vld [vmem:[%s3413_s13 + $0x10] sm:$0xff] }
 0x681   : > { %1332 = vmatprep.mubr.f32.mxu0 %v1218_v44  ;;  %v1589_v44 = vld [vmem:[%s3413_s13 + $0x18] sm:$0xff] }
 0x682   : > { %1333 = vmatmul.mubr.f32.vlgmr.msra.gmra.mrb[2].mxu0 %v1217_v45  ;;  %v2315_v45 = vpack.c.bf16 %v1589_v44, %v1588_v42  ;;  %v1747_v44 = vld [vmem:[%s3415_s15 + $0x30] sm:$0xff] }
 0x6dd   : > { %v1404_v46 = vpop.f32.mrb[10].mxu1 }
 0x6de   : > { %v2086_v47 = vpop.f32.mrb[11].mxu1 }
 0x6df   : > { %v1590_v47 = vld [vmem:[%s3413_s13 + $0x20] sm:$0xff] }
 0x6e0   : > { %v2319_v49 = vpack.c.bf16 %v1591_v48, %v1590_v47  ;;  %v1749_v48 = vld [vmem:[%s3415_s15 + $0x40] sm:$0xff] }
 0x755   : > { %v1982_v13 = vpop.f32.mrb[2].mxu0 }
 0x756   : > { %v1983_v16 = vpop.f32.mrb[3].mxu0 }
 0x757   : > { %v1984_v19 = vadd.f32 %v1983_v16, %v1982_v13 }
 0x759   : > { %v1335_v21 = vadd.f32 %v1984_v19, %v1916_v15 }
 0x75b   : > { %v1405_v23 = vadd.f32 %v1404_v46, %v1335_v21  ;;  %v1918_v46 = vld [vmem:[%s3412_s12] ss:$0 sm:$0xff] }
 0x75d   : > { %v1408_v24 = vmax.f32 %v1405_v23, 0.0 }
 0x75f   : > { %v1410_v25 = vrot.slane %v1408_v24, 5 }
 0x761   : > { %v1412_v22 = vsel %vm783_vm14, 0.0, %v1410_v25 }
 0x762   : > { %v1414_v26 = vrot.slane %v1412_v22, 1  ;;  %v1430_v28 = vrot.slane %v1412_v22, 4  ;;  %v1418_v29 = vrot.slane %v1412_v22, 2  ;;  %v1424_v30 = vrot.slane %v1412_v22, 3 }
 0x764   : > { %1415 = vrot.lane.b32.xlu0 %v1414_v26, %s2491_s24  ;;  %v1431_v32 = vsel %vm610_vm5, %v1430_v28, %v2854_v50  ;;  %v1420_v34 = vsel %vm581_vm4, %v1418_v29, %v1419_v27  ;;  %v1426_v36 = vsel %vm562_vm3, %v1424_v30, %v1425_v31  ;;  %v1586_v50 = vld [vmem:[%s3413_s13] sm:$0xff]  ;;  %v1742_v31 = vld [vmem:[%s3415_s15 + $0x8] sm:$0xff] }
 0x765   : > { %1919 = vmatprep.mubr.msk.f32.mxu1 %vm824_vm6, %v1431_v32  ;;  %1421 = vrot.lane.b32.xlu1 %v1420_v34, %s2492_s21  ;;  %v2311_v43 = vpack.c.bf16 %v1587_v35, %v1586_v50  ;;  %v1741_v30 = vld [vmem:[%s3415_s15] sm:$0xff]  ;;  %v1743_v32 = vld [vmem:[%s3415_s15 + $0x10] sm:$0xff] }
 0x766   : > { %v2332_v34 = vpack.c.bf16 %v1742_v31, %v1741_v30 }
 0x767   : > { %2312 = vmatprep.subr.bf16.mxu0 %v2311_v43 }
 0x768   : > { %1427 = vrot.lane.b32.xlu0 %v1426_v36, %s3446_s26  ;;  %2314 = vmatpush3.bf16.msra.mxu0 %v2311_v43  ;;  %v1744_v36 = vld [vmem:[%s3415_s15 + $0x18] sm:$0xff]  ;;  %s2497_s26 = smov 33  }
 0x769   : > { %2316 = vmatprep.subr.bf16.mxu0 %v2315_v45 }
 0x76c   : > { %2318 = vmatpush3.bf16.msra.mxu0 %v2315_v45  ;;  %v1748_v45 = vld [vmem:[%s3415_s15 + $0x38] sm:$0xff] }
 0x76d   : > { %2320 = vmatprep.subr.bf16.mxu0 %v2319_v49 }
 0x770   : > { %2322 = vmatpush3.bf16.msra.mxu0 %v2319_v49  ;;  %v1750_v49 = vld [vmem:[%s3415_s15 + $0x48] sm:$0xff] }
 0x771   : > { %2324 = vmatprep.subr.bf16.mxu0 %v2323_v57 }
 0x774   : > { %2326 = vmatpush3.bf16.msra.mxu0 %v2323_v57 }
 0x775   : > { %2328 = vmatprep.subr.bf16.mxu0 %v2327_v63 }
 0x778   : > { %2330 = vmatpush3.bf16.msra.mxu0 %v2327_v63 }
 0x779   : > { %2331 = vmatprep.subr.bf16.mxu0 %v2482_v2 }
 0x7d6   : > { %v1416_v37 = vpop.permute.xlu0 %1415 }
 0x7d7   : > { %v1432_v38 = vsel %vm824_vm6, %v1412_v22, %v1416_v37  ;;  %v1422_v39 = vpop.permute.xlu1 %1421  ;;  %v2335_v37 = vpack.c.bf16 %v1744_v36, %v1743_v32 }
 0x7d8   : > { %v1433_v40 = vsel %vm827_vm7, %v1432_v38, %v1422_v39  ;;  %v1745_v38 = vld [vmem:[%s3415_s15 + $0x20] sm:$0xff]  ;;  %v1746_v39 = vld [vmem:[%s3415_s15 + $0x28] sm:$0xff] }
 0x7da   : > { %v1428_v41 = vpop.permute.xlu0 %1427 }
 0x7db   : > { %v1434_v33 = vsel %vm943_vm9, %v1433_v40, %v1428_v41  ;;  %v2338_v40 = vpack.c.bf16 %v1746_v39, %v1745_v38  ;;  %v1920_v41 = vld [vmem:[%s3414_s14] ss:$0 sm:$0xff] }
 0x7dc   : > { %1529 = vmatmul.mubr.f32.vlgmr.msra.gmra.mrb[12].mxu1 %v1434_v33 }
 0x8af   : > { %v1530_v51 = vpop.f32.mrb[12].mxu1 }
 0x8b0   : > { %v1531_v52 = vadd.f32 %v1918_v46, %v1530_v51  ;;  %v1532_v53 = vpop.f32.mrb[13].mxu1  ;;  %v2341_v46 = vpack.c.bf16 %v1748_v45, %v1747_v44  ;;  %v2344_v51 = vpack.c.bf16 %v1750_v49, %v1749_v48 }
 0x8b2   : > { %v1534_v56 = vmax.f32 %v1531_v52, 0.0 }
 0x8b4   : > { %v1536_v58 = vrot.slane %v1534_v56, 5  ;;  %v2347_v56 = vpack.c.bf16 %v1752_v55, %v1751_v54 }
 0x8b6   : > { %v1538_v61 = vsel %vm783_vm14, 0.0, %v1536_v58  ;;  %v1539_v62 = vsel %vm781_vm13, %v1536_v58, 0.0 }
 0x8b7   : > { %v1543_v0 = vrot.slane %v1539_v62, 1  ;;  %v1542_v1 = vrot.slane %v1538_v61, 1  ;;  %v1552_v4 = vrot.slane %v1539_v62, 2  ;;  %v1551_v5 = vrot.slane %v1538_v61, 2 }
 0x8b8   : > { %v1561_v7 = vrot.slane %v1539_v62, 3  ;;  %v1560_v8 = vrot.slane %v1538_v61, 3  ;;  %v1570_v10 = vrot.slane %v1539_v62, 4  ;;  %v1569_v11 = vrot.slane %v1538_v61, 4 }
 0x8b9   : > { %1547 = vrot.lane.b32.xlu0 %v1543_v0, %s3447_s0  ;;  %v1544_v3 = vsel %vm566_vm1, %v1542_v1, %v1543_v0  ;;  %v1553_v6 = vsel %vm581_vm4, %v1551_v5, %v1552_v4  ;;  %vm1727_vm1 = vcmask 179200   ;;  %vm1733_vm4 = vcmask 449536  }
 0x8ba   : > { %1545 = vrot.lane.b32.xlu1 %v1544_v3, %s3447_s0  ;;  %v1562_v9 = vsel %vm562_vm3, %v1560_v8, %v1561_v7  ;;  %v1571_v12 = vsel %vm610_vm5, %v1569_v11, %v1570_v10  ;;  %vm1731_vm3 = vcmask 359424   ;;  %vm1735_vm5 = vcmask 539648  }
 0x8bd   : > { %1556 = vrot.lane.b32.xlu0 %v1552_v4, %s2491_s24 }
 0x8be   : > { %1554 = vrot.lane.b32.xlu1 %v1553_v6, %s2491_s24  ;;  %s2494_s24 = smov 22  }
 0x8c1   : > { %1565 = vrot.lane.b32.xlu0 %v1561_v7, %s3448_s18 }
 0x8c2   : > { %1563 = vrot.lane.b32.xlu1 %v1562_v9, %s3448_s18 }
 0x8c5   : > { %1574 = vrot.lane.b32.xlu0 %v1570_v10, %s2492_s21 }
 0x8c6   : > { %1572 = vrot.lane.b32.xlu1 %v1571_v12, %s2492_s21  ;;  %s2495_s21 = smov 11  }
 0x92b   : > { %v1548_v13 = vpop.permute.xlu0 %1547 }
 0x92c   : > { %v1546_v15 = vpop.permute.xlu1 %1545  ;;  %v1579_v21 = vsel %vm822_vm15, %v1539_v62, %v1548_v13 }
 0x92d   : > { %v1578_v20 = vsel %vm822_vm15, %v1538_v61, %v1546_v15 }
 0x92f   : > { %v1557_v16 = vpop.permute.xlu0 %1556 }
 0x930   : > { %v1555_v17 = vpop.permute.xlu1 %1554  ;;  %v1581_v25 = vsel %vm824_vm6, %v1579_v21, %v1557_v16 }
 0x931   : > { %v1580_v23 = vsel %vm824_vm6, %v1578_v20, %v1555_v17 }
 0x933   : > { %v1566_v18 = vpop.permute.xlu0 %1565 }
 0x934   : > { %v1564_v19 = vpop.permute.xlu1 %1563  ;;  %v1583_v26 = vsel %vm637_vm11, %v1581_v25, %v1566_v18 }
 0x935   : > { %v1582_v27 = vsel %vm637_vm11, %v1580_v23, %v1564_v19  ;;  %vm1739_vm11 = vcmask 719872  }
 0x937   : > { %v1575_v24 = vpop.permute.xlu0 %1574 }
 0x938   : > { %v1573_v22 = vpop.permute.xlu1 %1572  ;;  %v1585_v29 = vsel %vm827_vm7, %v1583_v26, %v1575_v24 }
 0x939   : > { %v1584_v28 = vsel %vm827_vm7, %v1582_v27, %v1573_v22 }
 0x93a   : > { %2107 = vmatprep.mubr.msk.f32.mxu0 %vm846_vm8, %v1584_v28 }
 0x93b   : > { %2108 = vmatmul.mubr.msk.f32.vlgmr.msra.gmra.mrb[4].mxu0 %vm846_vm8, %v1585_v29 }
 0x93c   : > { %2136 = vmatprep.mubr.msk.f32.mxu0 %vm2483_vm2, %v2484_v14  ;;  %2333 = vmatpush3.bf16.msra.mxu0 %v2332_v34  ;;  %vm1729_vm2 = vcmask 269312  }
 0x93d   : > { %2334 = vmatprep.subr.bf16.mxu0 %v2482_v2 }
 0x940   : > { %2336 = vmatpush3.bf16.msra.mxu0 %v2335_v37 }
 0x941   : > { %2337 = vmatprep.subr.bf16.mxu0 %v2482_v2 }
 0x944   : > { %2339 = vmatpush3.bf16.msra.mxu0 %v2338_v40 }
 0x945   : > { %2340 = vmatprep.subr.bf16.mxu0 %v2482_v2 }
 0x948   : > { %2342 = vmatpush3.bf16.msra.mxu0 %v2341_v46 }
 0x949   : > { %2343 = vmatprep.subr.bf16.mxu0 %v2482_v2 }
 0x94c   : > { %2345 = vmatpush3.bf16.msra.mxu0 %v2344_v51 }
 0x94d   : > { %2346 = vmatprep.subr.bf16.mxu0 %v2482_v2  ;;  %v1753_v2 = vld [vmem:[%s3415_s15 + $0x60] sm:$0x7] }
 0x950   : > { %2348 = vmatpush3.bf16.msra.mxu0 %v2347_v56 }
 0x951   : > { %2134 = vmatprep.subr.mxu0 %v2484_v14 }
 0x954   : > { %2135 = vmatpush3.msk.msra.mxu0 %vm783_vm14, %v1753_v2 }
 0xa0e   : > { %v2109_v33 = vpop.f32.mrb[4].mxu0 }
 0xa0f   : > { %v1675_v50 = vpop.f32.mrb[5].mxu0  ;;  %v1681_v43 = vadd.f32 %v2109_v33, %v1920_v41 }
 0xa10   : > { %v1676_v35 = vadd.f32 %v1920_v41, %v1675_v50 }
 0xa11   : > { %v1685_v47 = vmul.f32 0.5, %v1681_v43 }
 0xa12   : > { %v1684_v42 = vmul.f32 0.5, %v1676_v35 }
 0xa14   : > { %2414 = vtanh.f32 %v1684_v42 }
 0xa15   : > { %2416 = vtanh.f32 %v1685_v47 }
 0xa1e   : > { %v2415_v52 = vpop.eup %2414 }
 0xa1f   : > { %v1688_v53 = vadd.f32 1.0, %v2415_v52  ;;  %v2417_v62 = vpop.eup %2416 }
 0xa20   : > { %v1689_v63 = vadd.f32 1.0, %v2417_v62 }
 0xa21   : > { %v1690_v57 = vmul.f32 0.5, %v1688_v53 }
 0xa22   : > { %v1691_v1 = vmul.f32 0.5, %v1689_v63 }
 0xa23   : > { %v1697_v58 = vrot.slane %v1690_v57, 2  ;;  %v1693_v59 = vrot.slane %v1690_v57, 1  ;;  %v1705_v60 = vrot.slane %v1690_v57, 4  ;;  %v1701_v61 = vrot.slane %v1690_v57, 3 }
 0xa24   : > { %v1713_v0 = vrot.slane %v1690_v57, 6  ;;  %v1709_v14 = vrot.slane %v1690_v57, 5  ;;  %v1717_v3 = vrot.slane %v1690_v57, 7 }
 0xa25   : > { %1698 = vrot.lane.b32.xlu0 %v1697_v58, %s2494_s24  ;;  %1694 = vrot.lane.b32.xlu1 %v1693_v59, %s2495_s21  ;;  %s3449_s24 = sld [smem:[#allocation13_spill]]  ;;  %s1925_s21 = sshll.u32 %s2614_s28, 4 }
 0xa26   : > { %s2502_s28 = smov [#allocation2]  }
 0xa27   : > { %s2422_s0 = sshll.u32 %s2502_s28, 4  ;;  %s2423_s0 = int_to_ptr.vmem [resolvable:$false] %s2422_s0 }
 0xa28   : > { %s2424_s18 = scalar_lea.vmem %s2423_s0, 32  ;;  %p2425_p0 = scmp.lt.s32.totalorder %s3360_s22, %s2423_s0 }
 0xa29   : > { %1706 = vrot.lane.b32.xlu0 %v1705_v60, %s2496_s29  ;;  %1702 = vrot.lane.b32.xlu1 %v1701_v61, %s2497_s26 }
 0xa2b   : > { %v1754_v21 = vld [vmem:[%s3449_s24] sm:$0x1] }
 0xa2d   : > { %1714 = vrot.lane.b32.xlu0 %v1713_v0, %s2498_s30  ;;  %1710 = vrot.lane.b32.xlu1 %v1709_v14, %s2499_s19  ;;  %s3450_s30 = sld [smem:[#allocation14_spill]] }
 0xa31   : > { %1722 = vrot.lane.b32.xlu0 %v1691_v1, %s2500_s27  ;;  %1718 = vrot.lane.b32.xlu1 %v1717_v3, %s2501_s17  ;;  %s1834_s27 = scalar_lea.sflag [#allocation3], %s539_s20  ;;  %s2418_s17 = scalar_lea.vmem %s3360_s22, 16 }
 0xa32   : > { %p2419_p11 = scmp.ne.s32.totalorder %s3360_s22, %s2418_s17  ;;  %p2426_p1 = scmp.lt.s32.totalorder %s2424_s18, %s2418_s17 }
 0xa33   : > { %s3358_s19 = scalar_lea.hbm %s3450_s30, %s1925_s21 }
 0xa34   : > { %p2420_p12 = pnand %p2419_p11, %p2631_p5  ;;  %p2427_p2 = por %p2426_p1, %p2425_p0 }
 0xa36   : > { %p2421_p13 = pneg %p2420_p12 }
 0xa38   : > { %p2428_p3 = pnand %p2427_p2, %p2421_p13 }
 0xa97   : > { %v1699_v4 = vpop.permute.xlu0 %1698  ;;  %v1695_v5 = vpop.permute.xlu1 %1694 }
 0xa98   : > { %v1726_v6 = vsel %vm1725_vm0, %v1690_v57, %v1695_v5 }
 0xa99   : > { %v1728_v8 = vsel %vm1727_vm1, %v1726_v6, %v1699_v4 }
 0xa9b   : > { %v1707_v7 = vpop.permute.xlu0 %1706  ;;  %v1703_v9 = vpop.permute.xlu1 %1702 }
 0xa9c   : > { %v1730_v10 = vsel %vm1729_vm2, %v1728_v8, %v1703_v9 }
 0xa9d   : > { %v1732_v12 = vsel %vm1731_vm3, %v1730_v10, %v1707_v7 }
 0xa9f   : > { %v1715_v11 = vpop.permute.xlu0 %1714  ;;  %v1711_v13 = vpop.permute.xlu1 %1710 }
 0xaa0   : > { %v1734_v15 = vsel %vm1733_vm4, %v1732_v12, %v1711_v13 }
 0xaa1   : > { %v1736_v17 = vsel %vm1735_vm5, %v1734_v15, %v1715_v11 }
 0xaa3   : > { %v1723_v16 = vpop.permute.xlu0 %1722  ;;  %v1719_v18 = vpop.permute.xlu1 %1718 }
 0xaa4   : > { %v1738_v19 = vsel %vm1737_vm10, %v1736_v17, %v1719_v18 }
 0xaa5   : > { %v1740_v20 = vsel %vm1739_vm11, %v1738_v19, %v1723_v16 }
 0xaa6   : > { %2137 = vmatmul.mubr.msk.f32.vlgmr.msra.gmra.mrb[6].mxu0 %vm1755_vm12, %v1740_v20 }
 0xb79   : > { %v1828_v23 = vpop.f32.mrb[6].mxu0 }
 0xb7a   : > { %v1829_v24 = vadd.f32 %v1828_v23, %v1754_v21  ;;  %v2138_v25 = vpop.f32.mrb[7].mxu0 }
 0xb7c   : > { %1832 = vst [vmem:[%s540_s16] sm:$0x1] %v1829_v24 }
 0xb7d   : > { %2431 = shalt.err (!%p2428_p3)
}
 0xb7e   : > { %s2432_s20 = scalar_lea.hbm %s3358_s19, 16  ;;  %s2436_s16 = scalar_lea.hbm %s3450_s30, 32 }
 0xb7f   : > { %p2433_p4 = scmp.ne.s32.totalorder %s3358_s19, %s2432_s20  ;;  %p2437_p9 = scmp.lt.u32.totalorder %s3358_s19, %s3450_s30 }
 0xb80   : > { %p2438_p10 = scmp.lt.u32.totalorder %s2436_s16, %s2432_s20  ;;  %p2440_p12 = scmp.lt.u32.totalorder %s2432_s20, %s3358_s19 }
 0xb81   : > { %p2434_p7 = pnand %p2433_p4, %p2631_p5 }
 0xb82   : > { %p2439_p11 = por %p2438_p10, %p2437_p9 }
 0xb83   : > { %p2435_p8 = pneg %p2434_p7 }
 0xb84   : > { %p2441_p13 = por %p2440_p12, %p2439_p11 }
 0xb86   : > { %p2442_p0 = pnand %p2441_p13, %p2435_p8 }
 0xb88   : > { %2445 = shalt.err (!%p2442_p0)
}
 0xb89   : > { %2350 = dma.vmem_to_hbm [thread:$0]  (%p2631_p5), %s3360_s22, 16, %s3358_s19, %s1834_s27  }
 0xb8a PF: > { %s3451_s17 = sld [smem:[#allocation7_spill]]  ;;  %s3452_s28 = sld [smem:[#allocation5_spill]] }
 0xb90   : > { %p2356_p1 = scmp.ge.s32.totalorder %s3451_s17, 2  ;;  %s1858_s18 = sand.u32 1, %s3452_s28  }
 0xb91   : > { %s1859_s24 = scalar_lea.sflag [#allocation3], %s1858_s18 }
 0xb92   : > { %p2353_p2 = pnand %p2356_p1, %p2635_p6 }
 0xb94   : > { %2463 = dma.done.wait (!%p2353_p2), %s1859_s24, 16  }
 0xb95   : > { %2465 = vsyncadd (!%p2353_p2), %s1859_s24, 4294967280  ;;  %s3454_s27 = sld [smem:[#allocation8_spill]]  ;;  %s3455_s20 = sld [smem:[#allocation6_spill]] }
 0xb96   : > { %s3456_s26 = sld [smem:[#allocation9_spill]]  ;;  %s3457_s24 = smov %s2472_s25 }
 0xb9b   : > { %p27_p3 = scmp.ge.s32.totalorder %s3454_s27, 4   ;;  %s3458_s25 = smov %s3455_s20 }
 0xb9d   :  { %29 = sbr.rel (!%p27_p3) target bundleno = 8 (0x8), region = 123 }
 0xba4   :  { %1863 = vsyncpa [#allocation3], 1 }
 0xba5   :  { %1865 = vsyncpa [#allocation3 + $0x1], 1 }

</bundles_post_ra>
